<compile_context>
chip_gen: v6e
topology: v6e:2x2x1
jax: 0.10.0
libtpu: 0.0.40
codegen_flags: <defaults>
</compile_context>

<pallas_src>
import jax
import jax.numpy as jnp
from jax.experimental import pallas as pl
from jax.experimental.pallas import tpu as pltpu

# Layer sizes from Regressor.__init__ (fc1..fc6)
LAYER_DIMS = [2, 1024, 512, 256, 128, 18, 2]

# Bias packing: each layer's bias starts at a lane-aligned (multiple-of-128)
# offset inside one contiguous (1, _BIAS_TOTAL) f32 slab.
_BIAS_OFFSETS = []
_off = 0
for _d in LAYER_DIMS[1:]:
    _BIAS_OFFSETS.append(_off)
    _off += ((_d + 127) // 128) * 128
_BIAS_TOTAL = _off  # 2176


def _regressor_kernel(x_ref, b_ref,
                      w1_ref, w2_ref, w3_ref, w4_ref, w5_ref, w6_ref,
                      o_ref):
    """Whole 6-layer MLP forward for one (tm, 2) batch tile, resident in VMEM."""
    o1, o2, o3, o4, o5, o6 = _BIAS_OFFSETS
    d1, d2, d3, d4, d5, d6 = LAYER_DIMS[1:]

    # --- fc1 (K=2): two VPU broadcast FMAs instead of a wasted K=2 MXU pass. ---
    x = x_ref[...].astype(jnp.float32)                      # (tm, 2)
    w1 = w1_ref[...].astype(jnp.float32)                    # (2, 1024)
    h = (x[:, 0:1] * w1[0:1, :] + x[:, 1:2] * w1[1:2, :]
         + b_ref[:, o1:o1 + d1])
    h = jnp.maximum(h, 0.0).astype(jnp.bfloat16)            # carry acts in bf16

    # --- fc2..fc5: bf16 operands on the MXU, f32 accumulation + bias + ReLU. ---
    def layer(h_bf16, w_ref, off, dim):
        acc = jnp.dot(h_bf16, w_ref[...], preferred_element_type=jnp.float32)
        return jnp.maximum(acc + b_ref[:, off:off + dim], 0.0)

    h = layer(h, w2_ref, o2, d2).astype(jnp.bfloat16)       # (tm, 512)
    h = layer(h, w3_ref, o3, d3).astype(jnp.bfloat16)       # (tm, 256)
    h = layer(h, w4_ref, o4, d4).astype(jnp.bfloat16)       # (tm, 128)
    h = layer(h, w5_ref, o5, d5)                            # (tm, 18), f32

    # --- fc6 (18 -> 2): two XLU lane reductions, no near-empty MXU pass. ---
    w6 = w6_ref[...].astype(jnp.float32)                    # (2, 18), pre-transposed
    y0 = jnp.sum(h * w6[0:1, :], axis=-1, keepdims=True)    # (tm, 1)
    y1 = jnp.sum(h * w6[1:2, :], axis=-1, keepdims=True)    # (tm, 1)
    y = jnp.concatenate([y0, y1], axis=-1) + b_ref[:, o6:o6 + d6]
    o_ref[...] = y.astype(o_ref.dtype)


def _tpu_generation_info():
    """Best-effort TPU generation detection for tile / VMEM-budget selection."""
    kind = ""
    try:
        kind = (getattr(jax.devices()[0], "device_kind", "") or "").lower()
    except Exception:
        pass
    if "v7" in kind:
        # 2 TensorCores/chip, 64 MiB VMEM per core: even step counts, tm <= 2048.
        return dict(num_cores=2, tm_cap=2048, vmem_limit=48 * 1024 * 1024)
    if "v5 lite" in kind or "v5e" in kind or "v6 lite" in kind or "v6e" in kind:
        # Single TensorCore, 128 MiB VMEM: prefer one (or very few) big steps.
        return dict(num_cores=1, tm_cap=4096, vmem_limit=96 * 1024 * 1024)
    # Unknown generation: conservative defaults safe everywhere.
    return dict(num_cores=1, tm_cap=2048, vmem_limit=48 * 1024 * 1024)


def _pick_tm(B, *, num_cores=1, tm_cap=2048):
    """Batch-tile heuristic.

    Tiny batches (<=256) are weight-DMA latency bound: one grid step.
    Otherwise: largest tile <= tm_cap that divides B, is a multiple of 8
    (preferably 256 to fill MXU row blocks), and — on multi-core chips —
    yields a step count divisible by num_cores so both TensorCores get work.
    """
    if B <= 256 or B % 8 != 0:
        return B
    if num_cores == 1 and B <= tm_cap:
        return B
    cands = [c for c in range(8, min(tm_cap, B) + 1, 8) if B % c == 0]
    if not cands:
        return B  # no well-shaped divisor; fall back to a single step
    def balanced(c):
        return (B // c) % num_cores == 0
    for pred in (lambda c: balanced(c) and c % 256 == 0,
                 lambda c: balanced(c),
                 lambda c: c % 256 == 0,
                 lambda c: True):
        sel = [c for c in cands if pred(c)]
        if sel:
            return max(sel)
    return B


def prepare_params(params):
    """One-time conversion of [(W (in,out) f32, b (out,) f32), ...] into the
    kernel layout: bf16 weights (fc6 pre-transposed to (2, 18) for the XLU
    epilogue) plus all six biases packed into one lane-aligned f32 slab.
    Call once and reuse so per-call dtype casts stay off the measured path."""
    assert len(params) == len(LAYER_DIMS) - 1
    weights = []
    bias = jnp.zeros((1, _BIAS_TOTAL), jnp.float32)
    for i, (w, b) in enumerate(params):
        fan_in, fan_out = LAYER_DIMS[i], LAYER_DIMS[i + 1]
        assert w.shape == (fan_in, fan_out)
        wk = jnp.asarray(w).astype(jnp.bfloat16)
        if i == len(params) - 1:
            wk = wk.T                                   # (2, 18)
        weights.append(wk)
        off = _BIAS_OFFSETS[i]
        bias = bias.at[0, off:off + fan_out].set(
            jnp.asarray(b, jnp.float32).reshape(-1))
    return tuple(weights), bias


def regressor_forward(x, kernel_params, *, tm=None):
    """x: (B, 2) float array. kernel_params: output of prepare_params()."""
    weights, bias_packed = kernel_params
    B, D_in = x.shape
    assert D_in == LAYER_DIMS[0]
    D_out = LAYER_DIMS[-1]

    info = _tpu_generation_info()
    if tm is None:
        tm = _pick_tm(B, num_cores=info["num_cores"], tm_cap=info["tm_cap"])
    assert B % tm == 0, "batch must be a multiple of the batch tile"
    assert tm == B or tm % 8 == 0, "batch tile must be a multiple of 8 (or the full batch)"

    x = x.astype(jnp.float32)

    def invariant(shape):
        # Grid-invariant block: single-buffered, no needless double-buffering.
        return pl.BlockSpec(shape, lambda i: (0, 0), pipeline_mode=pl.Buffered(1))

    in_specs = ([pl.BlockSpec((tm, D_in), lambda i: (i, 0)),
                 invariant(bias_packed.shape)]
                + [invariant(w.shape) for w in weights])
    out_spec = pl.BlockSpec((tm, D_out), lambda i: (i, 0))

    return pl.pallas_call(
        _regressor_kernel,
        out_shape=jax.ShapeDtypeStruct((B, D_out), jnp.float32),
        grid_spec=pltpu.PrefetchScalarGridSpec(
            num_scalar_prefetch=0,
            grid=(B // tm,),
            in_specs=in_specs,
            out_specs=out_spec,
        ),
        compiler_params=pltpu.CompilerParams(
            dimension_semantics=("parallel",),
            vmem_limit_bytes=info["vmem_limit"],
        ),
    )(x, bias_packed, *weights)


def init_params(key):
    """PyTorch-Linear-style init: U(-1/sqrt(fan_in), 1/sqrt(fan_in)).
    Weights returned pre-transposed as (in_features, out_features) f32,
    biases as (out_features,) f32."""
    params = []
    for idx in range(len(LAYER_DIMS) - 1):
        fan_in, fan_out = LAYER_DIMS[idx], LAYER_DIMS[idx + 1]
        key, kw, kb = jax.random.split(key, 3)
        bound = 1.0 / jnp.sqrt(fan_in)
        w = jax.random.uniform(kw, (fan_in, fan_out), jnp.float32, -bound, bound)
        b = jax.random.uniform(kb, (fan_out,), jnp.float32, -bound, bound)
        params.append((w, b))
    return params


def reference_forward(x, params):
    """Pure-JAX reference mirroring the kernel's numerics (bf16 weights, bf16
    activations with f32 accumulation for fc2..fc5, f32 paths for fc1/fc6)."""
    h = x.astype(jnp.float32)
    last = len(params) - 1
    for i, (w, b) in enumerate(params):
        wb = w.astype(jnp.bfloat16)
        if i == 0:
            h = h @ wb.astype(jnp.float32) + b
        elif i == last:
            h = h @ wb.astype(jnp.float32) + b
        else:
            h = jnp.dot(h.astype(jnp.bfloat16), wb,
                        preferred_element_type=jnp.float32) + b
        if i < last:
            h = jnp.maximum(h, 0.0)
    return h


if __name__ == "__main__":
    key = jax.random.PRNGKey(0)
    key, kx = jax.random.split(key)
    params = init_params(key)
    kparams = prepare_params(params)   # one-time bf16 conversion + bias packing

    # Small latency-style batch: single grid step.
    B = 16
    x = jax.random.normal(kx, (B, 2), jnp.float32)
    out = jax.block_until_ready(regressor_forward(x, kparams))
    ref = reference_forward(x, params)
    assert out.shape == (B, 2)
    assert jnp.allclose(out, ref, atol=1e-2, rtol=1e-2), "mismatch vs reference (B=16)"

    # Multi-step grid path (batch tiled over the parallel grid axis).
    B2 = 64
    key, kx2 = jax.random.split(key)
    x2 = jax.random.normal(kx2, (B2, 2), jnp.float32)
    out2 = jax.block_until_ready(regressor_forward(x2, kparams, tm=16))
    ref2 = reference_forward(x2, params)
    assert out2.shape == (B2, 2)
    assert jnp.allclose(out2, ref2, atol=1e-2, rtol=1e-2), "mismatch vs reference (B=64)"

    print("KERNEL_OK")
</pallas_src>

<mosaic_0001>
module attributes {stable_mosaic.version = 11 : i64} {
  func.func @_regressor_kernel(%arg0: i32, %arg1: memref<16x2xf32, #tpu.memory_space<vmem>>, %arg2: memref<1x2176xf32, #tpu.memory_space<vmem>>, %arg3: memref<2x1024xbf16, #tpu.memory_space<vmem>>, %arg4: memref<1024x512xbf16, #tpu.memory_space<vmem>>, %arg5: memref<512x256xbf16, #tpu.memory_space<vmem>>, %arg6: memref<256x128xbf16, #tpu.memory_space<vmem>>, %arg7: memref<128x18xbf16, #tpu.memory_space<vmem>>, %arg8: memref<2x18xbf16, #tpu.memory_space<vmem>>, %arg9: memref<16x2xf32, #tpu.memory_space<vmem>>) attributes {dimension_semantics = [#tpu.dimension_semantics<parallel>], iteration_bounds = array<i64: 1>, scalar_prefetch = 0 : i64, scratch_operands = 0 : i64, tpu.core_type = #tpu.core_type<tc>, window_params = [{transform_indices = @transform_0, window_bounds = array<i64: 16, 2>}, {pipeline_mode = #tpu.pipeline_mode<synchronous>, transform_indices = @transform_1, window_bounds = array<i64: 1, 2176>}, {pipeline_mode = #tpu.pipeline_mode<synchronous>, transform_indices = @transform_2, window_bounds = array<i64: 2, 1024>}, {pipeline_mode = #tpu.pipeline_mode<synchronous>, transform_indices = @transform_3, window_bounds = array<i64: 1024, 512>}, {pipeline_mode = #tpu.pipeline_mode<synchronous>, transform_indices = @transform_4, window_bounds = array<i64: 512, 256>}, {pipeline_mode = #tpu.pipeline_mode<synchronous>, transform_indices = @transform_5, window_bounds = array<i64: 256, 128>}, {pipeline_mode = #tpu.pipeline_mode<synchronous>, transform_indices = @transform_6, window_bounds = array<i64: 128, 18>}, {pipeline_mode = #tpu.pipeline_mode<synchronous>, transform_indices = @transform_7, window_bounds = array<i64: 2, 18>}, {transform_indices = @transform_8, window_bounds = array<i64: 16, 2>}]} {
    %c0 = arith.constant 0 : index
    %c0_0 = arith.constant 0 : index
    %0 = vector.load %arg1[%c0, %c0_0] : memref<16x2xf32, #tpu.memory_space<vmem>>, vector<16x2xf32>
    %c0_1 = arith.constant 0 : index
    %c0_2 = arith.constant 0 : index
    %1 = vector.load %arg3[%c0_1, %c0_2] : memref<2x1024xbf16, #tpu.memory_space<vmem>>, vector<2x1024xbf16>
    %2 = arith.extf %1 : vector<2x1024xbf16> to vector<2x1024xf32>
    %3 = vector.extract_strided_slice %0 {offsets = [0, 0], sizes = [16, 1], strides = [1, 1]} : vector<16x2xf32> to vector<16x1xf32>
    %4 = vector.extract_strided_slice %2 {offsets = [0, 0], sizes = [1, 1024], strides = [1, 1]} : vector<2x1024xf32> to vector<1x1024xf32>
    %5 = vector.broadcast %3 : vector<16x1xf32> to vector<16x1024xf32>
    %6 = vector.broadcast %4 : vector<1x1024xf32> to vector<16x1024xf32>
    %7 = arith.mulf %5, %6 : vector<16x1024xf32>
    %8 = vector.extract_strided_slice %0 {offsets = [0, 1], sizes = [16, 1], strides = [1, 1]} : vector<16x2xf32> to vector<16x1xf32>
    %9 = vector.extract_strided_slice %2 {offsets = [1, 0], sizes = [1, 1024], strides = [1, 1]} : vector<2x1024xf32> to vector<1x1024xf32>
    %10 = vector.broadcast %8 : vector<16x1xf32> to vector<16x1024xf32>
    %11 = vector.broadcast %9 : vector<1x1024xf32> to vector<16x1024xf32>
    %12 = arith.mulf %10, %11 : vector<16x1024xf32>
    %13 = arith.addf %7, %12 : vector<16x1024xf32>
    %c0_3 = arith.constant 0 : index
    %c0_4 = arith.constant 0 : index
    %14 = vector.load %arg2[%c0_3, %c0_4] : memref<1x2176xf32, #tpu.memory_space<vmem>>, vector<1x1024xf32>
    %15 = vector.broadcast %14 : vector<1x1024xf32> to vector<16x1024xf32>
    %16 = arith.addf %13, %15 : vector<16x1024xf32>
    %cst = arith.constant 0.000000e+00 : f32
    %17 = vector.broadcast %cst : f32 to vector<16x1024xf32>
    %18 = arith.maximumf %16, %17 : vector<16x1024xf32>
    %19 = arith.truncf %18 : vector<16x1024xf32> to vector<16x1024xbf16>
    %c0_5 = arith.constant 0 : index
    %c0_6 = arith.constant 0 : index
    %20 = vector.load %arg4[%c0_5, %c0_6] : memref<1024x512xbf16, #tpu.memory_space<vmem>>, vector<1024x512xbf16>
    %cst_7 = arith.constant dense<0.000000e+00> : vector<16x512xf32>
    %21 = tpu.matmul %19, %20, %cst_7 {dimension_numbers = #tpu.dot_dimension_numbers<[1], [0], [0], [1], [0, 0, 1, 1], [], []>} : vector<16x1024xbf16>, vector<1024x512xbf16>, vector<16x512xf32> -> vector<16x512xf32>
    %c0_8 = arith.constant 0 : index
    %c1024 = arith.constant 1024 : index
    %22 = vector.load %arg2[%c0_8, %c1024] : memref<1x2176xf32, #tpu.memory_space<vmem>>, vector<1x512xf32>
    %23 = vector.broadcast %22 : vector<1x512xf32> to vector<16x512xf32>
    %24 = arith.addf %21, %23 : vector<16x512xf32>
    %cst_9 = arith.constant 0.000000e+00 : f32
    %25 = vector.broadcast %cst_9 : f32 to vector<16x512xf32>
    %26 = arith.maximumf %24, %25 : vector<16x512xf32>
    %27 = arith.truncf %26 : vector<16x512xf32> to vector<16x512xbf16>
    %c0_10 = arith.constant 0 : index
    %c0_11 = arith.constant 0 : index
    %28 = vector.load %arg5[%c0_10, %c0_11] : memref<512x256xbf16, #tpu.memory_space<vmem>>, vector<512x256xbf16>
    %cst_12 = arith.constant dense<0.000000e+00> : vector<16x256xf32>
    %29 = tpu.matmul %27, %28, %cst_12 {dimension_numbers = #tpu.dot_dimension_numbers<[1], [0], [0], [1], [0, 0, 1, 1], [], []>} : vector<16x512xbf16>, vector<512x256xbf16>, vector<16x256xf32> -> vector<16x256xf32>
    %c0_13 = arith.constant 0 : index
    %c1536 = arith.constant 1536 : index
    %30 = vector.load %arg2[%c0_13, %c1536] : memref<1x2176xf32, #tpu.memory_space<vmem>>, vector<1x256xf32>
    %31 = vector.broadcast %30 : vector<1x256xf32> to vector<16x256xf32>
    %32 = arith.addf %29, %31 : vector<16x256xf32>
    %cst_14 = arith.constant 0.000000e+00 : f32
    %33 = vector.broadcast %cst_14 : f32 to vector<16x256xf32>
    %34 = arith.maximumf %32, %33 : vector<16x256xf32>
    %35 = arith.truncf %34 : vector<16x256xf32> to vector<16x256xbf16>
    %c0_15 = arith.constant 0 : index
    %c0_16 = arith.constant 0 : index
    %36 = vector.load %arg6[%c0_15, %c0_16] : memref<256x128xbf16, #tpu.memory_space<vmem>>, vector<256x128xbf16>
    %cst_17 = arith.constant dense<0.000000e+00> : vector<16x128xf32>
    %37 = tpu.matmul %35, %36, %cst_17 {dimension_numbers = #tpu.dot_dimension_numbers<[1], [0], [0], [1], [0, 0, 1, 1], [], []>} : vector<16x256xbf16>, vector<256x128xbf16>, vector<16x128xf32> -> vector<16x128xf32>
    %c0_18 = arith.constant 0 : index
    %c1792 = arith.constant 1792 : index
    %38 = vector.load %arg2[%c0_18, %c1792] : memref<1x2176xf32, #tpu.memory_space<vmem>>, vector<1x128xf32>
    %39 = vector.broadcast %38 : vector<1x128xf32> to vector<16x128xf32>
    %40 = arith.addf %37, %39 : vector<16x128xf32>
    %cst_19 = arith.constant 0.000000e+00 : f32
    %41 = vector.broadcast %cst_19 : f32 to vector<16x128xf32>
    %42 = arith.maximumf %40, %41 : vector<16x128xf32>
    %43 = arith.truncf %42 : vector<16x128xf32> to vector<16x128xbf16>
    %c0_20 = arith.constant 0 : index
    %c0_21 = arith.constant 0 : index
    %44 = vector.load %arg7[%c0_20, %c0_21] : memref<128x18xbf16, #tpu.memory_space<vmem>>, vector<128x18xbf16>
    %cst_22 = arith.constant dense<0.000000e+00> : vector<16x18xf32>
    %45 = tpu.matmul %43, %44, %cst_22 {dimension_numbers = #tpu.dot_dimension_numbers<[1], [0], [0], [1], [0, 0, 1, 1], [], []>} : vector<16x128xbf16>, vector<128x18xbf16>, vector<16x18xf32> -> vector<16x18xf32>
    %c0_23 = arith.constant 0 : index
    %c1920 = arith.constant 1920 : index
    %46 = vector.load %arg2[%c0_23, %c1920] : memref<1x2176xf32, #tpu.memory_space<vmem>>, vector<1x18xf32>
    %47 = vector.broadcast %46 : vector<1x18xf32> to vector<16x18xf32>
    %48 = arith.addf %45, %47 : vector<16x18xf32>
    %cst_24 = arith.constant 0.000000e+00 : f32
    %49 = vector.broadcast %cst_24 : f32 to vector<16x18xf32>
    %50 = arith.maximumf %48, %49 : vector<16x18xf32>
    %c0_25 = arith.constant 0 : index
    %c0_26 = arith.constant 0 : index
    %51 = vector.load %arg8[%c0_25, %c0_26] : memref<2x18xbf16, #tpu.memory_space<vmem>>, vector<2x18xbf16>
    %52 = arith.extf %51 : vector<2x18xbf16> to vector<2x18xf32>
    %53 = vector.extract_strided_slice %52 {offsets = [0, 0], sizes = [1, 18], strides = [1, 1]} : vector<2x18xf32> to vector<1x18xf32>
    %54 = vector.broadcast %53 : vector<1x18xf32> to vector<16x18xf32>
    %55 = arith.mulf %50, %54 : vector<16x18xf32>
    %cst_27 = arith.constant dense<0.000000e+00> : vector<16xf32>
    %56 = vector.multi_reduction <add>, %55, %cst_27 [1] : vector<16x18xf32> to vector<16xf32>
    %57 = vector.shape_cast %56 : vector<16xf32> to vector<16x1xf32>
    %58 = vector.extract_strided_slice %52 {offsets = [1, 0], sizes = [1, 18], strides = [1, 1]} : vector<2x18xf32> to vector<1x18xf32>
    %59 = vector.broadcast %58 : vector<1x18xf32> to vector<16x18xf32>
    %60 = arith.mulf %50, %59 : vector<16x18xf32>
    %cst_28 = arith.constant dense<0.000000e+00> : vector<16xf32>
    %61 = vector.multi_reduction <add>, %60, %cst_28 [1] : vector<16x18xf32> to vector<16xf32>
    %62 = vector.shape_cast %61 : vector<16xf32> to vector<16x1xf32>
    %63 = tpu.concatenate %57, %62 in 1 : vector<16x1xf32>, vector<16x1xf32> -> vector<16x2xf32>
    %c0_29 = arith.constant 0 : index
    %c2048 = arith.constant 2048 : index
    %64 = vector.load %arg2[%c0_29, %c2048] : memref<1x2176xf32, #tpu.memory_space<vmem>>, vector<1x2xf32>
    %65 = vector.broadcast %64 : vector<1x2xf32> to vector<16x2xf32>
    %66 = arith.addf %63, %65 : vector<16x2xf32>
    %c0_30 = arith.constant 0 : index
    %c0_31 = arith.constant 0 : index
    %67 = vector.load %arg9[%c0_30, %c0_31] : memref<16x2xf32, #tpu.memory_space<vmem>>, vector<16x2xf32>
    tpu.vector_store %arg9[%c0_30, %c0_31], %66 {strides = array<i32>} : memref<16x2xf32, #tpu.memory_space<vmem>>, vector<16x2xf32>,
    return
  }
  func.func @transform_0(%arg0: i32) -> (i32, i32) {
    %c0_i32 = arith.constant 0 : i32
    %c0_i32_0 = arith.constant 0 : i32
    return %arg0, %c0_i32 : i32, i32
  }
  func.func @transform_1(%arg0: i32) -> (i32, i32) {
    %c0_i32 = arith.constant 0 : i32
    %c0_i32_0 = arith.constant 0 : i32
    %c0_i32_1 = arith.constant 0 : i32
    return %c0_i32, %c0_i32_0 : i32, i32
  }
  func.func @transform_2(%arg0: i32) -> (i32, i32) {
    %c0_i32 = arith.constant 0 : i32
    %c0_i32_0 = arith.constant 0 : i32
    %c0_i32_1 = arith.constant 0 : i32
    return %c0_i32, %c0_i32_0 : i32, i32
  }
  func.func @transform_3(%arg0: i32) -> (i32, i32) {
    %c0_i32 = arith.constant 0 : i32
    %c0_i32_0 = arith.constant 0 : i32
    %c0_i32_1 = arith.constant 0 : i32
    return %c0_i32, %c0_i32_0 : i32, i32
  }
  func.func @transform_4(%arg0: i32) -> (i32, i32) {
    %c0_i32 = arith.constant 0 : i32
    %c0_i32_0 = arith.constant 0 : i32
    %c0_i32_1 = arith.constant 0 : i32
    return %c0_i32, %c0_i32_0 : i32, i32
  }
  func.func @transform_5(%arg0: i32) -> (i32, i32) {
    %c0_i32 = arith.constant 0 : i32
    %c0_i32_0 = arith.constant 0 : i32
    %c0_i32_1 = arith.constant 0 : i32
    return %c0_i32, %c0_i32_0 : i32, i32
  }
  func.func @transform_6(%arg0: i32) -> (i32, i32) {
    %c0_i32 = arith.constant 0 : i32
    %c0_i32_0 = arith.constant 0 : i32
    %c0_i32_1 = arith.constant 0 : i32
    return %c0_i32, %c0_i32_0 : i32, i32
  }
  func.func @transform_7(%arg0: i32) -> (i32, i32) {
    %c0_i32 = arith.constant 0 : i32
    %c0_i32_0 = arith.constant 0 : i32
    %c0_i32_1 = arith.constant 0 : i32
    return %c0_i32, %c0_i32_0 : i32, i32
  }
  func.func @transform_8(%arg0: i32) -> (i32, i32) {
    %c0_i32 = arith.constant 0 : i32
    %c0_i32_0 = arith.constant 0 : i32
    return %arg0, %c0_i32 : i32, i32
  }
}

</mosaic_0001>

<bundles_post_ra>
// kernel: tpu_custom_call.1
= control target key start
LH: loop header
LB: loop body
LE: loop exit
PB: predicated region body
PF: predicated region fallthrough
CT: control target
= control target key end

     0   :  { %13 = vsyncpa [#allocation3], 0  ;;  %s4402_s0 = inlined_call_operand.vmem [shape: f32[16,2], index: 0, kind: input, shape index: {}]   ;;  %s4403_s1 = inlined_call_operand.vmem [shape: f32[1,2176], index: 1, kind: input, shape index: {}]   ;;  %s4404_s2 = inlined_call_operand.vmem [shape: bf16[2,1024], index: 2, kind: input, shape index: {}]   ;;  %s4405_s3 = inlined_call_operand.hbm [shape: bf16[1024,512], index: 3, kind: input, shape index: {}]   ;;  %s4406_s4 = inlined_call_operand.hbm [shape: bf16[512,256], index: 4, kind: input, shape index: {}]   ;;  %s4407_s5 = inlined_call_operand.hbm [shape: bf16[256,128], index: 5, kind: input, shape index: {}]   ;;  %s4408_s6 = inlined_call_operand.vmem [shape: bf16[128,18], index: 6, kind: input, shape index: {}]   ;;  %s4409_s7 = inlined_call_operand.vmem [shape: bf16[2,18], index: 7, kind: input, shape index: {}]   ;;  %s4410_s8 = inlined_call_operand.vmem [shape: f32[16,2], index: 8, kind: output, shape index: {}]  }
   0x1   :  { %14 = vsyncpa [#allocation5], 0  ;;  %s4095_s27 = smov [#allocation4]  }
   0x2   :  { %s38_s28 = sshll.u32 %s4095_s27, 4  ;;  %s39_s28 = int_to_ptr.vmem [resolvable:$true] %s38_s28 }
   0x3   :  { %s4039_s29 = scalar_lea.vmem %s39_s28, 8192  ;;  %p4044_p1 = scmp.lt.s32.totalorder %s39_s28, %s39_s28 }
   0x4   :  { %p4040_p0 = scmp.ne.s32.totalorder %s39_s28, %s4039_s29  ;;  %p4045_p2 = scmp.lt.s32.totalorder %s4039_s29, %s4039_s29 }
   0x6   :  { %p4046_p3 = por %p4045_p2, %p4044_p1 }
   0x8   :  { %p4047_p4 = pnand %p4046_p3, %p4040_p0 }
   0xa   :  { %4050 = shalt.err (!%p4047_p4)
}
   0xb   :  { %s4096_s30 = smov 128   ;;  %s4097_s9 = smov 8  }
   0xc   :  { %44 = dma.hbm_to_vmem [thread:$0]  %s4406_s4, 8192, %s39_s28, [#allocation5], %s4096_s30, %s4096_s30, %s4097_s9  }
   0xd   :  { %s4098_s12 = smov [#allocation2]  }
   0xe   :  { %s26_s13 = sshll.u32 %s4098_s12, 4  ;;  %s27_s13 = int_to_ptr.vmem [resolvable:$true] %s26_s13 }
   0xf   :  { %s4059_s14 = scalar_lea.vmem %s27_s13, 32768  ;;  %p4064_p6 = scmp.lt.s32.totalorder %s27_s13, %s27_s13 }
  0x10   :  { %p4060_p5 = scmp.ne.s32.totalorder %s27_s13, %s4059_s14  ;;  %p4065_p7 = scmp.lt.s32.totalorder %s4059_s14, %s4059_s14 }
  0x12   :  { %p4066_p8 = por %p4065_p7, %p4064_p6 }
  0x14   :  { %p4067_p9 = pnand %p4066_p8, %p4060_p5 }
  0x16   :  { %4070 = shalt.err (!%p4067_p9)
}
  0x17   :  { %s4099_s15 = smov 256   ;;  %s4100_s16 = smov 16  }
  0x18   :  { %32 = dma.hbm_to_vmem [thread:$0]  %s4405_s3, 32768, %s27_s13, [#allocation3], %s4099_s15, %s4099_s15, %s4100_s16  }
  0x19   :  { %s4101_s19 = smov [#allocation6]  }
  0x1a   :  { %s50_s20 = sshll.u32 %s4101_s19, 4  ;;  %s51_s20 = int_to_ptr.vmem [resolvable:$true] %s50_s20 }
  0x1b   :  { %s4079_s4 = scalar_lea.vmem %s51_s20, 2048  ;;  %p4084_p11 = scmp.lt.s32.totalorder %s51_s20, %s51_s20 }
  0x1c   :  { %p4080_p10 = scmp.ne.s32.totalorder %s51_s20, %s4079_s4  ;;  %p4085_p12 = scmp.lt.s32.totalorder %s4079_s4, %s4079_s4 }
  0x1e   :  { %p4086_p13 = por %p4085_p12, %p4084_p11 }
  0x20   :  { %p4087_p0 = pnand %p4086_p13, %p4080_p10 }
  0x22   :  { %4090 = shalt.err (!%p4087_p0)
}
  0x23   :  { %s4102_s21 = smov 64   ;;  %s4103_s22 = smov 4  }
  0x24   :  { %56 = dma.hbm_to_vmem [thread:$0]  %s4407_s5, 2048, %s51_s20, [#allocation5], %s4102_s21, %s4102_s21, %s4103_s22  }
  0x25   :  { %4091 = dma.done.wait [#allocation3], 32768  }
  0x26   :  { %4092 = vsyncadd [#allocation3], 4294934528 }
  0x27   :  { %4093 = dma.done.wait [#allocation5], 10240  }
  0x28   :  { %4094 = vsyncadd [#allocation5], 4294957056  ;;  %v4104_v0 = vmov 1   ;;  %v4105_v1 = vmov 0   ;;  %v71_v2 = vld [vmem:[%s4402_s0] sm:$0xff]  ;;  %v72_v3 = vld [vmem:[%s4402_s0 + $0x8] sm:$0xff]  ;;  %v88_v48 = vlaneseq }
  0x29   :  { %3525 = vset.pattern.permute.xlu1 %v4104_v0  ;;  %3524 = vset.pattern.permute.xlu0 %v4105_v1  ;;  %v3527_v4 = vld [vmem:[#allocation2 + $0xe4] ss:$16 sps:$4 sm:$0xff]   ;;  %v3531_v6 = vld [vmem:[#allocation2 + $0xe0] ss:$16 sps:$4 sm:$0xff]   ;;  %vm4107_vm0 = vmmov 0   ;;  %vm3073_vm1 = vcmask 146432  }
  0x2a   :  { %177 = vperm.xlu1 %3525, %v71_v2   ;;  %78 = vperm.xlu0 %3524, %v71_v2   ;;  %v3529_v5 = vld [vmem:[#allocation2 + $0x2e4] ss:$16 sps:$4 sm:$0xff]   ;;  %v3532_v7 = vld [vmem:[#allocation2 + $0x2e0] ss:$16 sps:$4 sm:$0xff]   ;;  %v89_v53 = vshrl.u32 %v88_v48, 7  ;;  %vm3092_vm2 = vcmask 7168  }
  0x2b   :  { %1928 = vmatprep.subr.bf16.mxu0 %v3527_v4  ;;  %1971 = vmatprep.subr.bf16.mxu1 %v3529_v5  ;;  %v3533_v8 = vld [vmem:[#allocation2 + $0xc4] ss:$16 sps:$4 sm:$0xff]   ;;  %v3537_v10 = vld [vmem:[#allocation2 + $0xc0] ss:$16 sps:$4 sm:$0xff]   ;;  %vm3104_vm3 = vcmask 15360  }
  0x2c   :  { %1929 = vmatpush1.bf16.msra.mxu0 %v3531_v6  ;;  %v3535_v9 = vld [vmem:[#allocation2 + $0x2c4] ss:$16 sps:$4 sm:$0xff]   ;;  %v3538_v11 = vld [vmem:[#allocation2 + $0x2c0] ss:$16 sps:$4 sm:$0xff]   ;;  %1972 = vmatpush1.bf16.msra.mxu1 %v3532_v7  ;;  %v4171_v59 = vsub.s32 4, %v89_v53 }
  0x2d   :  { %1930 = vmatprep.subr.bf16.mxu0 %v3533_v8  ;;  %v3539_v12 = vld [vmem:[#allocation2 + $0xa4] ss:$16 sps:$4 sm:$0xff]   ;;  %1973 = vmatprep.subr.bf16.mxu1 %v3535_v9  ;;  %v3543_v14 = vld [vmem:[#allocation2 + $0xa0] ss:$16 sps:$4 sm:$0xff]  }
  0x2e   :  { %181 = vperm.xlu1 %3525, %v72_v3   ;;  %83 = vperm.xlu0 %3524, %v72_v3   ;;  %v3541_v13 = vld [vmem:[#allocation2 + $0x2a4] ss:$16 sps:$4 sm:$0xff]   ;;  %v3544_v16 = vld [vmem:[#allocation2 + $0x2a0] ss:$16 sps:$4 sm:$0xff]  }
  0x2f   :  { %v3545_v15 = vld [vmem:[#allocation2 + $0x84] ss:$16 sps:$4 sm:$0xff]   ;;  %v3549_v18 = vld [vmem:[#allocation2 + $0x80] ss:$16 sps:$4 sm:$0xff]  }
  0x30   :  { %1931 = vmatpush1.bf16.msra.mxu0 %v3537_v10  ;;  %1974 = vmatpush1.bf16.msra.mxu1 %v3538_v11  ;;  %v3547_v17 = vld [vmem:[#allocation2 + $0x284] ss:$16 sps:$4 sm:$0xff]   ;;  %v3550_v20 = vld [vmem:[#allocation2 + $0x280] ss:$16 sps:$4 sm:$0xff]  }
  0x31   :  { %1932 = vmatprep.subr.bf16.mxu0 %v3539_v12  ;;  %1975 = vmatprep.subr.bf16.mxu1 %v3541_v13  ;;  %v3551_v19 = vld [vmem:[#allocation2 + $0x64] ss:$16 sps:$4 sm:$0xff]   ;;  %v3555_v22 = vld [vmem:[#allocation2 + $0x60] ss:$16 sps:$4 sm:$0xff]  }
  0x32   :  { %3526 = vset.pattern.permute.xlu0 %v4104_v0  ;;  %v3553_v21 = vld [vmem:[#allocation2 + $0x264] ss:$16 sps:$4 sm:$0xff]   ;;  %v3556_v24 = vld [vmem:[#allocation2 + $0x260] ss:$16 sps:$4 sm:$0xff]   ;;  %v4176_v0 = vsub.s32 6, %v89_v53 }
  0x33   :  { %v3557_v23 = vld [vmem:[#allocation2 + $0x44] ss:$16 sps:$4 sm:$0xff]   ;;  %v3561_v26 = vld [vmem:[#allocation2 + $0x40] ss:$16 sps:$4 sm:$0xff]  }
  0x34   :  { %1933 = vmatpush1.bf16.msra.mxu0 %v3543_v14  ;;  %1976 = vmatpush1.bf16.msra.mxu1 %v3544_v16  ;;  %v3559_v25 = vld [vmem:[#allocation2 + $0x244] ss:$16 sps:$4 sm:$0xff]   ;;  %v3562_v28 = vld [vmem:[#allocation2 + $0x240] ss:$16 sps:$4 sm:$0xff]   ;;  %v4184_v14 = vsub.s32 2, %v89_v53  ;;  %v4186_v16 = vsub.s32 1, %v89_v53 }
  0x35   :  { %1934 = vmatprep.subr.bf16.mxu0 %v3545_v15  ;;  %1977 = vmatprep.subr.bf16.mxu1 %v3547_v17  ;;  %v3563_v27 = vld [vmem:[#allocation2 + $0x24] ss:$16 sps:$4 sm:$0xff]   ;;  %v3567_v30 = vld [vmem:[#allocation2 + $0x20] ss:$16 sps:$4 sm:$0xff]   ;;  %v4188_v17 = vsub.s32 3, %v89_v53 }
  0x36   :  { %v3565_v29 = vld [vmem:[#allocation2 + $0x224] ss:$16 sps:$4 sm:$0xff]   ;;  %v3568_v32 = vld [vmem:[#allocation2 + $0x220] ss:$16 sps:$4 sm:$0xff]  }
  0x37   :  { %v3569_v31 = vld [vmem:[#allocation2 + $0x4] ss:$16 sps:$4 sm:$0xff]   ;;  %v3573_v34 = vld [vmem:[#allocation2] ss:$16 sps:$4 sm:$0xff]  }
  0x38   :  { %1935 = vmatpush1.bf16.msra.mxu0 %v3549_v18  ;;  %1978 = vmatpush1.bf16.msra.mxu1 %v3550_v20  ;;  %v3571_v33 = vld [vmem:[#allocation2 + $0x204] ss:$16 sps:$4 sm:$0xff]   ;;  %v3574_v36 = vld [vmem:[#allocation2 + $0x200] ss:$16 sps:$4 sm:$0xff]   ;;  %v198_v18 = vsub.s32 7, %v89_v53  ;;  %v194_v20 = vsub.s32 5, %v89_v53 }
  0x39   :  { %1936 = vmatprep.subr.bf16.mxu0 %v3551_v19  ;;  %1979 = vmatprep.subr.bf16.mxu1 %v3553_v21  ;;  %v3575_v35 = vld [vmem:[#allocation2 + $0x1e4] ss:$16 sps:$4 sm:$0xff]   ;;  %v3579_v38 = vld [vmem:[#allocation2 + $0x1e0] ss:$16 sps:$4 sm:$0xff]   ;;  %v4190_v19 = vsub.s32 0, %v89_v53 }
  0x3a   :  { %v3577_v37 = vld [vmem:[#allocation2 + $0x3e4] ss:$16 sps:$4 sm:$0xff]   ;;  %v3580_v40 = vld [vmem:[#allocation2 + $0x3e0] ss:$16 sps:$4 sm:$0xff]  }
  0x3b   :  { %v3581_v39 = vld [vmem:[#allocation2 + $0x1c4] ss:$16 sps:$4 sm:$0xff]   ;;  %v3585_v42 = vld [vmem:[#allocation2 + $0x1c0] ss:$16 sps:$4 sm:$0xff]  }
  0x3c   :  { %1937 = vmatpush1.bf16.msra.mxu0 %v3555_v22  ;;  %1980 = vmatpush1.bf16.msra.mxu1 %v3556_v24  ;;  %v3583_v41 = vld [vmem:[#allocation2 + $0x3c4] ss:$16 sps:$4 sm:$0xff]   ;;  %v3586_v44 = vld [vmem:[#allocation2 + $0x3c0] ss:$16 sps:$4 sm:$0xff]  }
  0x3d   :  { %1938 = vmatprep.subr.bf16.mxu0 %v3557_v23  ;;  %1981 = vmatprep.subr.bf16.mxu1 %v3559_v25  ;;  %v3587_v43 = vld [vmem:[#allocation2 + $0x1a4] ss:$16 sps:$4 sm:$0xff]   ;;  %v3591_v46 = vld [vmem:[#allocation2 + $0x1a0] ss:$16 sps:$4 sm:$0xff]  }
  0x3e   :  { %v3589_v45 = vld [vmem:[#allocation2 + $0x3a4] ss:$16 sps:$4 sm:$0xff]   ;;  %v3592_v49 = vld [vmem:[#allocation2 + $0x3a0] ss:$16 sps:$4 sm:$0xff]  }
  0x3f   :  { %v3593_v47 = vld [vmem:[#allocation2 + $0x184] ss:$16 sps:$4 sm:$0xff]   ;;  %v3597_v51 = vld [vmem:[#allocation2 + $0x180] ss:$16 sps:$4 sm:$0xff]  }
  0x40   :  { %1939 = vmatpush1.bf16.msra.mxu0 %v3561_v26  ;;  %1982 = vmatpush1.bf16.msra.mxu1 %v3562_v28  ;;  %v3595_v50 = vld [vmem:[#allocation2 + $0x384] ss:$16 sps:$4 sm:$0xff]   ;;  %v3598_v54 = vld [vmem:[#allocation2 + $0x380] ss:$16 sps:$4 sm:$0xff]  }
  0x41   :  { %1940 = vmatprep.subr.bf16.mxu0 %v3563_v27  ;;  %1983 = vmatprep.subr.bf16.mxu1 %v3565_v29  ;;  %v3599_v52 = vld [vmem:[#allocation2 + $0x164] ss:$16 sps:$4 sm:$0xff]   ;;  %v3603_v56 = vld [vmem:[#allocation2 + $0x160] ss:$16 sps:$4 sm:$0xff]  }
  0x42   :  { %v3601_v55 = vld [vmem:[#allocation2 + $0x364] ss:$16 sps:$4 sm:$0xff]   ;;  %v3604_v60 = vld [vmem:[#allocation2 + $0x360] ss:$16 sps:$4 sm:$0xff]  }
  0x43   :  { %v288_v57 = vld [vmem:[%s4403_s1] sm:$0xff] }
  0x44   :  { %1941 = vmatpush1.bf16.msra.mxu0 %v3567_v30  ;;  %1984 = vmatpush1.bf16.msra.mxu1 %v3568_v32  ;;  %v3605_v58 = vld [vmem:[#allocation2 + $0x144] ss:$16 sps:$4 sm:$0xff]   ;;  %v4174_v62 = vrot.slane %v288_v57, %v4171_v59  ;;  %v3609_v63 = vld [vmem:[#allocation2 + $0x140] ss:$16 sps:$4 sm:$0xff]   ;;  %v4179_v3 = vrot.slane %v288_v57, %v4176_v0  ;;  %v4193_v22 = vrot.slane %v288_v57, %v4186_v16 }
  0x45   :  { %1942 = vmatprep.subr.bf16.mxu0 %v3569_v31  ;;  %1985 = vmatprep.subr.bf16.mxu1 %v3571_v33  ;;  %v3607_v61 = vld [vmem:[#allocation2 + $0x344] ss:$16 sps:$4 sm:$0xff]   ;;  %v3610_v2 = vld [vmem:[#allocation2 + $0x340] ss:$16 sps:$4 sm:$0xff]   ;;  %v4196_v23 = vrot.slane %v288_v57, %v4188_v17  ;;  %v4199_v24 = vrot.slane %v288_v57, %v4190_v19  ;;  %v4202_v25 = vrot.slane %v288_v57, %v4184_v14 }
  0x46   :  { %v3611_v1 = vld [vmem:[#allocation2 + $0x124] ss:$16 sps:$4 sm:$0xff]   ;;  %v3615_v5 = vld [vmem:[#allocation2 + $0x120] ss:$16 sps:$4 sm:$0xff]   ;;  %v4204_v26 = vrot.slane %v288_v57, %v194_v20  ;;  %v4206_v27 = vrot.slane %v288_v57, %v198_v18 }
  0x47   :  { %v3613_v4 = vld [vmem:[#allocation2 + $0x324] ss:$16 sps:$4 sm:$0xff]   ;;  %v3616_v7 = vld [vmem:[#allocation2 + $0x320] ss:$16 sps:$4 sm:$0xff]  }
  0x48   :  { %1943 = vmatpush1.bf16.msra.mxu0 %v3573_v34  ;;  %1986 = vmatpush1.bf16.msra.mxu1 %v3574_v36  ;;  %v3617_v6 = vld [vmem:[#allocation2 + $0x104] ss:$16 sps:$4 sm:$0xff]   ;;  %v3621_v9 = vld [vmem:[#allocation2 + $0x100] ss:$16 sps:$4 sm:$0xff]  }
  0x49   :  { %1944 = vmatprep.subr.bf16.mxu0 %v3575_v35  ;;  %1987 = vmatprep.subr.bf16.mxu1 %v3577_v37  ;;  %v3619_v8 = vld [vmem:[#allocation2 + $0x304] ss:$16 sps:$4 sm:$0xff]   ;;  %v3622_v11 = vld [vmem:[#allocation2 + $0x300] ss:$16 sps:$4 sm:$0xff]  }
  0x4a   :  { %v3625_v10 = vld [vmem:[#allocation2 + $0x4e4] ss:$16 sps:$4 sm:$0xff]  }
  0x4b   :  { %v3628_v12 = vld [vmem:[#allocation2 + $0x6e4] ss:$16 sps:$4 sm:$0xff]  }
  0x4c   :  { %1945 = vmatpush2.bf16.msra.mxu0 %v3579_v38  ;;  %1988 = vmatpush2.bf16.msra.mxu1 %v3580_v40  ;;  %v73_v13 = vld [vmem:[%s4404_s2] sm:$0xff] }
  0x4d   :  { %1946 = vmatprep.subr.bf16.mxu0 %v3581_v39  ;;  %1989 = vmatprep.subr.bf16.mxu1 %v3583_v41  ;;  %v74_v15 = vunpack.c.l.bf16 %v73_v13  ;;  %v75_v21 = vunpack.c.h.bf16 %v73_v13 }
  0x4f   :  { %v95_v28 = vrot.slane %v74_v15, %v4184_v14  ;;  %v191_v29 = vrot.slane %v74_v15, %v4188_v17  ;;  %v103_v30 = vrot.slane %v74_v15, %v4176_v0  ;;  %v199_v31 = vrot.slane %v74_v15, %v198_v18 }
  0x50   :  { %1947 = vmatpush2.bf16.msra.mxu0 %v3585_v42  ;;  %1990 = vmatpush2.bf16.msra.mxu1 %v3586_v44  ;;  %v91_v32 = vrot.slane %v74_v15, %v4190_v19  ;;  %v187_v33 = vrot.slane %v74_v15, %v4186_v16  ;;  %v99_v34 = vrot.slane %v74_v15, %v4171_v59 }
  0x51   :  { %1948 = vmatprep.subr.bf16.mxu0 %v3587_v43  ;;  %1991 = vmatprep.subr.bf16.mxu1 %v3589_v45  ;;  %v195_v35 = vrot.slane %v74_v15, %v194_v20  ;;  %v111_v36 = vrot.slane %v75_v21, %v4184_v14  ;;  %v207_v37 = vrot.slane %v75_v21, %v4188_v17 }
  0x52   :  { %v119_v38 = vrot.slane %v75_v21, %v4176_v0  ;;  %v215_v39 = vrot.slane %v75_v21, %v198_v18  ;;  %v107_v40 = vrot.slane %v75_v21, %v4190_v19  ;;  %v203_v41 = vrot.slane %v75_v21, %v4186_v16 }
  0x53   :  { %v115_v42 = vrot.slane %v75_v21, %v4171_v59  ;;  %v211_v43 = vrot.slane %v75_v21, %v194_v20  ;;  %v135_v44 = vrot.slane %v95_v28, %v4190_v19  ;;  %v231_v45 = vrot.slane %v191_v29, %v4186_v16 }
  0x54   :  { %1949 = vmatpush2.bf16.msra.mxu0 %v3591_v46  ;;  %1992 = vmatpush2.bf16.msra.mxu1 %v3592_v49  ;;  %v143_v46 = vrot.slane %v103_v30, %v4190_v19  ;;  %v131_v48 = vrot.slane %v91_v32, %v4190_v19  ;;  %v227_v49 = vrot.slane %v187_v33, %v4186_v16 }
  0x55   :  { %1950 = vmatprep.subr.bf16.mxu0 %v3593_v47  ;;  %1993 = vmatprep.subr.bf16.mxu1 %v3595_v50  ;;  %v239_v47 = vrot.slane %v199_v31, %v4186_v16  ;;  %v139_v50 = vrot.slane %v99_v34, %v4190_v19  ;;  %v247_v53 = vrot.slane %v207_v37, %v4186_v16 }
  0x56   :  { %v4240_v59 = vrot.slane %v203_v41, %v4186_v16 }
  0x58   :  { %1951 = vmatpush2.bf16.msra.mxu0 %v3597_v51  ;;  %1994 = vmatpush2.bf16.msra.mxu1 %v3598_v54  ;;  %v235_v51 = vrot.slane %v195_v35, %v4186_v16  ;;  %v159_v54 = vrot.slane %v119_v38, %v4190_v19 }
  0x59   :  { %1952 = vmatprep.subr.bf16.mxu0 %v3599_v52  ;;  %1995 = vmatprep.subr.bf16.mxu1 %v3601_v55  ;;  %v151_v52 = vrot.slane %v111_v36, %v4190_v19  ;;  %v255_v55 = vrot.slane %v215_v39, %v4186_v16 }
  0x5c   :  { %1953 = vmatpush2.bf16.msra.mxu0 %v3603_v56  ;;  %1996 = vmatpush2.bf16.msra.mxu1 %v3604_v60  ;;  %v4243_v60 = vrot.slane %v115_v42, %v4190_v19 }
  0x5d   :  { %1954 = vmatprep.subr.bf16.mxu0 %v3605_v58  ;;  %1997 = vmatprep.subr.bf16.mxu1 %v3607_v61  ;;  %v4237_v58 = vrot.slane %v107_v40, %v4190_v19  ;;  %v4246_v61 = vrot.slane %v211_v43, %v4186_v16 }
  0x60   :  { %1955 = vmatpush2.bf16.msra.mxu0 %v3609_v63  ;;  %1998 = vmatpush2.bf16.msra.mxu1 %v3610_v2 }
  0x61   :  { %1956 = vmatprep.subr.bf16.mxu0 %v3611_v1  ;;  %1999 = vmatprep.subr.bf16.mxu1 %v3613_v4 }
  0x64   :  { %1957 = vmatpush2.bf16.msra.mxu0 %v3615_v5  ;;  %2000 = vmatpush2.bf16.msra.mxu1 %v3616_v7 }
  0x65   :  { %1958 = vmatprep.subr.bf16.mxu0 %v3617_v6  ;;  %2001 = vmatprep.subr.bf16.mxu1 %v3619_v8 }
  0x68   :  { %1959 = vmatpush2.bf16.msra.mxu0 %v3621_v9  ;;  %2002 = vmatpush2.bf16.msra.mxu1 %v3622_v11 }
  0x69   :  { %2014 = vmatprep.subr.bf16.mxu0 %v3625_v10  ;;  %2057 = vmatprep.subr.bf16.mxu1 %v3628_v12 }
  0xa5   :  { %v4232_v56 = vpop.permute.xlu1 %177  ;;  %v4234_v57 = vpop.permute.xlu0 %78 }
  0xa6   :  { %v161_v63 = vmul.f32 %v135_v44, %v4234_v57  ;;  %v257_v0 = vmul.f32 %v231_v45, %v4232_v56  ;;  %v163_v1 = vmul.f32 %v143_v46, %v4234_v57  ;;  %v259_v2 = vmul.f32 %v239_v47, %v4232_v56 }
  0xa7   :  { %v160_v4 = vmul.f32 %v131_v48, %v4234_v57  ;;  %v256_v5 = vmul.f32 %v227_v49, %v4232_v56  ;;  %v162_v6 = vmul.f32 %v139_v50, %v4234_v57  ;;  %v258_v7 = vmul.f32 %v235_v51, %v4232_v56 }
  0xa8   :  { %v273_v8 = vadd.f32 %v257_v0, %v161_v63  ;;  %v275_v9 = vadd.f32 %v259_v2, %v163_v1  ;;  %v165_v10 = vmul.f32 %v151_v52, %v4234_v57  ;;  %v261_v11 = vmul.f32 %v247_v53, %v4232_v56 }
  0xa9   :  { %v4258_v12 = vpop.permute.xlu1 %181  ;;  %v4260_v13 = vpop.permute.xlu0 %83  ;;  %v272_v15 = vadd.f32 %v256_v5, %v160_v4  ;;  %v274_v18 = vadd.f32 %v258_v7, %v162_v6  ;;  %v167_v20 = vmul.f32 %v159_v54, %v4234_v57  ;;  %v263_v21 = vmul.f32 %v255_v55, %v4232_v56  ;;  %v3623_v5 = vld [vmem:[#allocation2 + $0x4e0] ss:$16 sps:$4 sm:$0xff]  }
  0xaa   :  { %v169_v28 = vmul.f32 %v135_v44, %v4260_v13  ;;  %v265_v29 = vmul.f32 %v231_v45, %v4258_v12  ;;  %v331_v30 = vadd.f32 %v4193_v22, %v273_v8  ;;  %v171_v31 = vmul.f32 %v143_v46, %v4260_v13  ;;  %v3631_v8 = vld [vmem:[#allocation2 + $0x4c4] ss:$16 sps:$4 sm:$0xff]  }
  0xab   :  { %v267_v32 = vmul.f32 %v239_v47, %v4258_v12  ;;  %v333_v33 = vadd.f32 %v4196_v23, %v275_v9  ;;  %v168_v34 = vmul.f32 %v131_v48, %v4260_v13  ;;  %v264_v35 = vmul.f32 %v227_v49, %v4258_v12 }
  0xac   :  { %v281_v36 = vadd.f32 %v265_v29, %v169_v28  ;;  %v347_v37 = vmax.f32 %v331_v30, 0.0  ;;  %v330_v38 = vadd.f32 %v4199_v24, %v272_v15  ;;  %v170_v39 = vmul.f32 %v139_v50, %v4260_v13  ;;  %v3629_v30 = vld [vmem:[#allocation2 + $0x4c0] ss:$16 sps:$4 sm:$0xff]  }
  0xad   :  { %v283_v40 = vadd.f32 %v267_v32, %v171_v31  ;;  %v349_v41 = vmax.f32 %v333_v33, 0.0  ;;  %v280_v42 = vadd.f32 %v264_v35, %v168_v34  ;;  %v266_v43 = vmul.f32 %v235_v51, %v4258_v12 }
  0xae   :  { %v339_v44 = vadd.f32 %v4193_v22, %v281_v36  ;;  %v346_v45 = vmax.f32 %v330_v38, 0.0  ;;  %v332_v46 = vadd.f32 %v4202_v25, %v274_v18  ;;  %v173_v47 = vmul.f32 %v151_v52, %v4260_v13  ;;  %v3634_v18 = vld [vmem:[#allocation2 + $0x6c4] ss:$16 sps:$4 sm:$0xff]  }
  0xaf   :  { %v341_v48 = vadd.f32 %v4196_v23, %v283_v40  ;;  %v338_v49 = vadd.f32 %v4199_v24, %v280_v42  ;;  %v282_v63 = vadd.f32 %v266_v43, %v170_v39  ;;  %v269_v0 = vmul.f32 %v247_v53, %v4258_v12  ;;  %v3626_v23 = vld [vmem:[#allocation2 + $0x6e0] ss:$16 sps:$4 sm:$0xff]   ;;  %v3640_v42 = vld [vmem:[#allocation2 + $0x6a4] ss:$16 sps:$4 sm:$0xff]  }
  0xb0   :  { %v355_v50 = vmax.f32 %v339_v44, 0.0  ;;  %v348_v1 = vmax.f32 %v332_v46, 0.0  ;;  %v277_v2 = vadd.f32 %v261_v11, %v165_v10  ;;  %v175_v4 = vmul.f32 %v159_v54, %v4260_v13  ;;  %v3643_v43 = vld [vmem:[#allocation2 + $0x484] ss:$16 sps:$4 sm:$0xff]  }
  0xb1   :  { %v357_v51 = vmax.f32 %v341_v48, 0.0  ;;  %v354_v22 = vmax.f32 %v338_v49, 0.0  ;;  %v340_v6 = vadd.f32 %v4202_v25, %v282_v63  ;;  %v285_v7 = vadd.f32 %v269_v0, %v173_v47  ;;  %v3646_v63 = vld [vmem:[#allocation2 + $0x684] ss:$16 sps:$4 sm:$0xff]  }
  0xb2   :  { %v4283_v52 = vpack.c.bf16 %v355_v50, %v347_v37  ;;  %v335_v24 = vadd.f32 %v4204_v26, %v277_v2  ;;  %v271_v9 = vmul.f32 %v255_v55, %v4258_v12  ;;  %v279_v53 = vadd.f32 %v263_v21, %v167_v20  ;;  %v3637_v37 = vld [vmem:[#allocation2 + $0x4a4] ss:$16 sps:$4 sm:$0xff]   ;;  %v3644_v2 = vld [vmem:[#allocation2 + $0x680] ss:$16 sps:$4 sm:$0xff]  }
  0xb3   :  { %v4287_v15 = vpack.c.bf16 %v357_v51, %v349_v41  ;;  %v4289_v10 = vpack.c.bf16 %v354_v22, %v346_v45  ;;  %v356_v54 = vmax.f32 %v340_v6, 0.0  ;;  %v343_v11 = vadd.f32 %v4204_v26, %v285_v7  ;;  %v3635_v41 = vld [vmem:[#allocation2 + $0x4a0] ss:$16 sps:$4 sm:$0xff]   ;;  %v3649_v0 = vld [vmem:[#allocation2 + $0x464] ss:$16 sps:$4 sm:$0xff]  }
  0xb4   :  { %1960 = vmatprep.mubr.bf16.mxu0 %v4283_v52  ;;  %v351_v25 = vmax.f32 %v335_v24, 0.0  ;;  %v287_v28 = vadd.f32 %v271_v9, %v175_v4  ;;  %v337_v29 = vadd.f32 %v4206_v27, %v279_v53  ;;  %v164_v31 = vmul.f32 %v4237_v58, %v4234_v57  ;;  %v3647_v4 = vld [vmem:[#allocation2 + $0x460] ss:$16 sps:$4 sm:$0xff]   ;;  %v3652_v51 = vld [vmem:[#allocation2 + $0x664] ss:$16 sps:$4 sm:$0xff]  }
  0xb5   :  { %2003 = vmatprep.mubr.bf16.mxu1 %v4287_v15  ;;  %1961 = vmatmul.mubr.bf16.vlgmr.msra.gmra.mxu0 %v4289_v10  ;;  %v4298_v55 = vpack.c.bf16 %v356_v54, %v348_v1  ;;  %v359_v20 = vmax.f32 %v343_v11, 0.0  ;;  %v172_v26 = vmul.f32 %v4237_v58, %v4260_v13  ;;  %v260_v21 = vmul.f32 %v4240_v59, %v4232_v56  ;;  %v3655_v22 = vld [vmem:[#allocation2 + $0x444] ss:$16 sps:$4 sm:$0xff]   ;;  %v3653_v6 = vld [vmem:[#allocation2 + $0x440] ss:$16 sps:$4 sm:$0xff]  }
  0xb6   :  { %2015 = vmatpush1.bf16.msra.mxu0 %v3623_v5  ;;  %v345_v32 = vadd.f32 %v4206_v27, %v287_v28  ;;  %v268_v33 = vmul.f32 %v4240_v59, %v4258_v12  ;;  %v166_v34 = vmul.f32 %v4243_v60, %v4234_v57  ;;  %v353_v36 = vmax.f32 %v337_v29, 0.0  ;;  %v3632_v27 = vld [vmem:[#allocation2 + $0x6c0] ss:$16 sps:$4 sm:$0xff]   ;;  %v3658_v7 = vld [vmem:[#allocation2 + $0x644] ss:$16 sps:$4 sm:$0xff]  }
  0xb7   :  { %2004 = vmatmul.mubr.bf16.vlgmr.msra.gmra.mxu1 %v4298_v55  ;;  %v4310_v35 = vpack.c.bf16 %v359_v20, %v351_v25  ;;  %2016 = vmatprep.subr.bf16.mxu0 %v3631_v8  ;;  %v276_v58 = vadd.f32 %v260_v21, %v164_v31  ;;  %v174_v38 = vmul.f32 %v4243_v60, %v4260_v13  ;;  %v3638_v60 = vld [vmem:[#allocation2 + $0x6a0] ss:$16 sps:$4 sm:$0xff]   ;;  %v3661_v8 = vld [vmem:[#allocation2 + $0x424] ss:$16 sps:$4 sm:$0xff]  }
  0xb8   :  { %2058 = vmatpush1.bf16.msra.mxu1 %v3626_v23  ;;  %v361_v39 = vmax.f32 %v345_v32, 0.0  ;;  %v284_v40 = vadd.f32 %v268_v33, %v172_v26  ;;  %v262_v59 = vmul.f32 %v4246_v61, %v4232_v56  ;;  %v270_v57 = vmul.f32 %v4246_v61, %v4258_v12  ;;  %v3641_v56 = vld [vmem:[#allocation2 + $0x480] ss:$16 sps:$4 sm:$0xff]   ;;  %v3664_v9 = vld [vmem:[#allocation2 + $0x624] ss:$16 sps:$4 sm:$0xff]  }
  0xb9   :  { %2046 = vmatprep.mubr.bf16.mxu0 %v4310_v35  ;;  %2059 = vmatprep.subr.bf16.mxu1 %v3634_v18  ;;  %v334_v44 = vadd.f32 %v4174_v62, %v276_v58  ;;  %v3656_v23 = vld [vmem:[#allocation2 + $0x640] ss:$16 sps:$4 sm:$0xff]   ;;  %v3667_v53 = vld [vmem:[#allocation2 + $0x404] ss:$16 sps:$4 sm:$0xff]  }
  0xba   :  { %v4320_v45 = vpack.c.bf16 %v361_v39, %v353_v36  ;;  %2017 = vmatpush1.bf16.msra.mxu0 %v3629_v30  ;;  %v342_v13 = vadd.f32 %v4174_v62, %v284_v40  ;;  %v278_v46 = vadd.f32 %v262_v59, %v166_v34  ;;  %v286_v47 = vadd.f32 %v270_v57, %v174_v38  ;;  %v3659_v24 = vld [vmem:[#allocation2 + $0x420] ss:$16 sps:$4 sm:$0xff]   ;;  %v3670_v18 = vld [vmem:[#allocation2 + $0x604] ss:$16 sps:$4 sm:$0xff]  }
  0xbb   :  { %2018 = vmatprep.subr.bf16.mxu0 %v3637_v37  ;;  %v350_v61 = vmax.f32 %v334_v44, 0.0  ;;  %v3662_v54 = vld [vmem:[#allocation2 + $0x620] ss:$16 sps:$4 sm:$0xff]   ;;  %v3673_v25 = vld [vmem:[#allocation2 + $0x5e4] ss:$16 sps:$4 sm:$0xff]  }
  0xbc   :  { %2089 = vmatprep.mubr.bf16.mxu1 %v4320_v45  ;;  %2060 = vmatpush1.bf16.msra.mxu1 %v3632_v27  ;;  %v358_v12 = vmax.f32 %v342_v13, 0.0  ;;  %v336_v48 = vadd.f32 %v4179_v3, %v278_v46  ;;  %v344_v49 = vadd.f32 %v4179_v3, %v286_v47  ;;  %v3650_v3 = vld [vmem:[#allocation2 + $0x660] ss:$16 sps:$4 sm:$0xff]   ;;  %v3676_v30 = vld [vmem:[#allocation2 + $0x7e4] ss:$16 sps:$4 sm:$0xff]  }
  0xbd   :  { %2061 = vmatprep.subr.bf16.mxu1 %v3640_v42  ;;  %v3665_v11 = vld [vmem:[#allocation2 + $0x400] ss:$16 sps:$4 sm:$0xff]   ;;  %v3679_v31 = vld [vmem:[#allocation2 + $0x5c4] ss:$16 sps:$4 sm:$0xff]  }
  0xbe   :  { %2019 = vmatpush1.bf16.msra.mxu0 %v3635_v41  ;;  %v4326_v50 = vpack.c.bf16 %v358_v12, %v350_v61  ;;  %v352_v62 = vmax.f32 %v336_v48, 0.0  ;;  %v360_v1 = vmax.f32 %v344_v49, 0.0  ;;  %v3668_v28 = vld [vmem:[#allocation2 + $0x600] ss:$16 sps:$4 sm:$0xff]   ;;  %v3682_v21 = vld [vmem:[#allocation2 + $0x7c4] ss:$16 sps:$4 sm:$0xff]  }
  0xbf   :  { %2020 = vmatprep.subr.bf16.mxu0 %v3643_v43  ;;  %v3671_v29 = vld [vmem:[#allocation2 + $0x5e0] ss:$16 sps:$4 sm:$0xff]   ;;  %v3685_v32 = vld [vmem:[#allocation2 + $0x5a4] ss:$16 sps:$4 sm:$0xff]   ;;  %v3721_v49 = vld [vmem:[#allocation2 + $0xec] ss:$16 sps:$4 sm:$0xff]  }
  0xc0   :  { %2062 = vmatpush1.bf16.msra.mxu1 %v3638_v60  ;;  %v4328_v5 = vpack.c.bf16 %v360_v1, %v352_v62  ;;  %v3674_v20 = vld [vmem:[#allocation2 + $0x7e0] ss:$16 sps:$4 sm:$0xff]   ;;  %v3688_v36 = vld [vmem:[#allocation2 + $0x7a4] ss:$16 sps:$4 sm:$0xff]   ;;  %v3724_v62 = vld [vmem:[#allocation2 + $0x2ec] ss:$16 sps:$4 sm:$0xff]  }
  0xc1   :  { %2063 = vmatprep.subr.bf16.mxu1 %v3646_v63  ;;  %v3677_v26 = vld [vmem:[#allocation2 + $0x5c0] ss:$16 sps:$4 sm:$0xff]   ;;  %v3691_v37 = vld [vmem:[#allocation2 + $0x584] ss:$16 sps:$4 sm:$0xff]   ;;  %v3727_v1 = vld [vmem:[#allocation2 + $0xcc] ss:$16 sps:$4 sm:$0xff]  }
  0xc2   :  { %2021 = vmatpush1.bf16.msra.mxu0 %v3641_v56  ;;  %v3680_v33 = vld [vmem:[#allocation2 + $0x7c0] ss:$16 sps:$4 sm:$0xff]   ;;  %v3694_v39 = vld [vmem:[#allocation2 + $0x784] ss:$16 sps:$4 sm:$0xff]  }
  0xc3   :  { %2022 = vmatprep.subr.bf16.mxu0 %v3649_v0  ;;  %v3683_v34 = vld [vmem:[#allocation2 + $0x5a0] ss:$16 sps:$4 sm:$0xff]   ;;  %v3697_v27 = vld [vmem:[#allocation2 + $0x564] ss:$16 sps:$4 sm:$0xff]   ;;  %v3719_v0 = vld [vmem:[#allocation2 + $0xe8] ss:$16 sps:$4 sm:$0xff]  }
  0xc4   :  { %2064 = vmatpush1.bf16.msra.mxu1 %v3644_v2  ;;  %v3686_v58 = vld [vmem:[#allocation2 + $0x7a0] ss:$16 sps:$4 sm:$0xff]   ;;  %v3700_v57 = vld [vmem:[#allocation2 + $0x764] ss:$16 sps:$4 sm:$0xff]   ;;  %v3722_v2 = vld [vmem:[#allocation2 + $0x2e8] ss:$16 sps:$4 sm:$0xff]  }
  0xc5   :  { %2065 = vmatprep.subr.bf16.mxu1 %v3652_v51  ;;  %v3689_v38 = vld [vmem:[#allocation2 + $0x580] ss:$16 sps:$4 sm:$0xff]   ;;  %v3703_v41 = vld [vmem:[#allocation2 + $0x544] ss:$16 sps:$4 sm:$0xff]   ;;  %v3725_v51 = vld [vmem:[#allocation2 + $0xc8] ss:$16 sps:$4 sm:$0xff]  }
  0xc6   :  { %2023 = vmatpush1.bf16.msra.mxu0 %v3647_v4  ;;  %v3692_v40 = vld [vmem:[#allocation2 + $0x780] ss:$16 sps:$4 sm:$0xff]   ;;  %v3706_v44 = vld [vmem:[#allocation2 + $0x744] ss:$16 sps:$4 sm:$0xff]   ;;  %v3730_v4 = vld [vmem:[#allocation2 + $0x2cc] ss:$16 sps:$4 sm:$0xff]  }
  0xc7   :  { %2024 = vmatprep.subr.bf16.mxu0 %v3655_v22  ;;  %v3695_v59 = vld [vmem:[#allocation2 + $0x560] ss:$16 sps:$4 sm:$0xff]   ;;  %v3709_v60 = vld [vmem:[#allocation2 + $0x524] ss:$16 sps:$4 sm:$0xff]   ;;  %v3733_v22 = vld [vmem:[#allocation2 + $0xac] ss:$16 sps:$4 sm:$0xff]  }
  0xc8   :  { %2066 = vmatpush1.bf16.msra.mxu1 %v3650_v3  ;;  %v3698_v42 = vld [vmem:[#allocation2 + $0x760] ss:$16 sps:$4 sm:$0xff]   ;;  %v3712_v47 = vld [vmem:[#allocation2 + $0x724] ss:$16 sps:$4 sm:$0xff]   ;;  %v3728_v3 = vld [vmem:[#allocation2 + $0x2c8] ss:$16 sps:$4 sm:$0xff]  }
  0xc9   :  { %2067 = vmatprep.subr.bf16.mxu1 %v3658_v7  ;;  %v3701_v43 = vld [vmem:[#allocation2 + $0x540] ss:$16 sps:$4 sm:$0xff]   ;;  %v3715_v56 = vld [vmem:[#allocation2 + $0x504] ss:$16 sps:$4 sm:$0xff]   ;;  %v3731_v7 = vld [vmem:[#allocation2 + $0xa8] ss:$16 sps:$4 sm:$0xff]  }
  0xca   :  { %2025 = vmatpush1.bf16.msra.mxu0 %v3653_v6  ;;  %v3704_v13 = vld [vmem:[#allocation2 + $0x740] ss:$16 sps:$4 sm:$0xff]   ;;  %v3718_v48 = vld [vmem:[#allocation2 + $0x704] ss:$16 sps:$4 sm:$0xff]   ;;  %v3736_v6 = vld [vmem:[#allocation2 + $0x2ac] ss:$16 sps:$4 sm:$0xff]  }
  0xcb   :  { %2026 = vmatprep.subr.bf16.mxu0 %v3661_v8  ;;  %v3707_v46 = vld [vmem:[#allocation2 + $0x520] ss:$16 sps:$4 sm:$0xff]   ;;  %v3739_v8 = vld [vmem:[#allocation2 + $0x8c] ss:$16 sps:$4 sm:$0xff]  }
  0xcc   :  { %2068 = vmatpush1.bf16.msra.mxu1 %v3656_v23  ;;  %v3710_v61 = vld [vmem:[#allocation2 + $0x720] ss:$16 sps:$4 sm:$0xff]   ;;  %v3734_v23 = vld [vmem:[#allocation2 + $0x2a8] ss:$16 sps:$4 sm:$0xff]  }
  0xcd   :  { %2069 = vmatprep.subr.bf16.mxu1 %v3664_v9  ;;  %v3713_v12 = vld [vmem:[#allocation2 + $0x500] ss:$16 sps:$4 sm:$0xff]   ;;  %v3737_v9 = vld [vmem:[#allocation2 + $0x88] ss:$16 sps:$4 sm:$0xff]  }
  0xce   :  { %2027 = vmatpush1.bf16.msra.mxu0 %v3659_v24  ;;  %v3716_v63 = vld [vmem:[#allocation2 + $0x700] ss:$16 sps:$4 sm:$0xff]   ;;  %v3742_v24 = vld [vmem:[#allocation2 + $0x28c] ss:$16 sps:$4 sm:$0xff]  }
  0xcf   :  { %2028 = vmatprep.subr.bf16.mxu0 %v3667_v53  ;;  %v3740_v53 = vld [vmem:[#allocation2 + $0x288] ss:$16 sps:$4 sm:$0xff]  }
  0xd0   :  { %2070 = vmatpush1.bf16.msra.mxu1 %v3662_v54  ;;  %v3748_v54 = vld [vmem:[#allocation2 + $0x26c] ss:$16 sps:$4 sm:$0xff]  }
  0xd1   :  { %2071 = vmatprep.subr.bf16.mxu1 %v3670_v18  ;;  %v3746_v18 = vld [vmem:[#allocation2 + $0x268] ss:$16 sps:$4 sm:$0xff]  }
  0xd2   :  { %2029 = vmatpush1.bf16.msra.mxu0 %v3665_v11  ;;  %v3743_v11 = vld [vmem:[#allocation2 + $0x68] ss:$16 sps:$4 sm:$0xff]  }
  0xd3   :  { %2030 = vmatprep.subr.bf16.mxu0 %v3673_v25  ;;  %v3754_v25 = vld [vmem:[#allocation2 + $0x24c] ss:$16 sps:$4 sm:$0xff]  }
  0xd4   :  { %2072 = vmatpush1.bf16.msra.mxu1 %v3668_v28  ;;  %v3749_v28 = vld [vmem:[#allocation2 + $0x48] ss:$16 sps:$4 sm:$0xff]  }
  0xd5   :  { %2073 = vmatprep.subr.bf16.mxu1 %v3676_v30  ;;  %v3752_v30 = vld [vmem:[#allocation2 + $0x248] ss:$16 sps:$4 sm:$0xff]  }
  0xd6   :  { %2031 = vmatpush2.bf16.msra.mxu0 %v3671_v29  ;;  %v3757_v29 = vld [vmem:[#allocation2 + $0x2c] ss:$16 sps:$4 sm:$0xff]  }
  0xd7   :  { %2032 = vmatprep.subr.bf16.mxu0 %v3679_v31  ;;  %v3760_v31 = vld [vmem:[#allocation2 + $0x22c] ss:$16 sps:$4 sm:$0xff]  }
  0xd8   :  { %2074 = vmatpush2.bf16.msra.mxu1 %v3674_v20  ;;  %v3755_v20 = vld [vmem:[#allocation2 + $0x28] ss:$16 sps:$4 sm:$0xff]  }
  0xd9   :  { %2075 = vmatprep.subr.bf16.mxu1 %v3682_v21  ;;  %v3758_v21 = vld [vmem:[#allocation2 + $0x228] ss:$16 sps:$4 sm:$0xff]  }
  0xda   :  { %2033 = vmatpush2.bf16.msra.mxu0 %v3677_v26  ;;  %v3763_v26 = vld [vmem:[#allocation2 + $0xc] ss:$16 sps:$4 sm:$0xff]  }
  0xdb   :  { %2034 = vmatprep.subr.bf16.mxu0 %v3685_v32  ;;  %v3766_v32 = vld [vmem:[#allocation2 + $0x20c] ss:$16 sps:$4 sm:$0xff]  }
  0xdc   :  { %2076 = vmatpush2.bf16.msra.mxu1 %v3680_v33  ;;  %v3761_v33 = vld [vmem:[#allocation2 + $0x8] ss:$16 sps:$4 sm:$0xff]  }
  0xdd   :  { %2077 = vmatprep.subr.bf16.mxu1 %v3688_v36  ;;  %v3764_v36 = vld [vmem:[#allocation2 + $0x208] ss:$16 sps:$4 sm:$0xff]  }
  0xde   :  { %2035 = vmatpush2.bf16.msra.mxu0 %v3683_v34  ;;  %v3769_v34 = vld [vmem:[#allocation2 + $0x1ec] ss:$16 sps:$4 sm:$0xff]  }
  0xdf   :  { %2036 = vmatprep.subr.bf16.mxu0 %v3691_v37  ;;  %v3772_v37 = vld [vmem:[#allocation2 + $0x3ec] ss:$16 sps:$4 sm:$0xff]  }
  0xe0   :  { %2078 = vmatpush2.bf16.msra.mxu1 %v3686_v58  ;;  %v3767_v58 = vld [vmem:[#allocation2 + $0x1e8] ss:$16 sps:$4 sm:$0xff]  }
  0xe1   :  { %2079 = vmatprep.subr.bf16.mxu1 %v3694_v39  ;;  %v3770_v39 = vld [vmem:[#allocation2 + $0x3e8] ss:$16 sps:$4 sm:$0xff]  }
  0xe2   :  { %2037 = vmatpush2.bf16.msra.mxu0 %v3689_v38  ;;  %v3775_v38 = vld [vmem:[#allocation2 + $0x1cc] ss:$16 sps:$4 sm:$0xff]  }
  0xe3   :  { %2038 = vmatprep.subr.bf16.mxu0 %v3697_v27  ;;  %v3778_v27 = vld [vmem:[#allocation2 + $0x3cc] ss:$16 sps:$4 sm:$0xff]  }
  0xe4   :  { %2080 = vmatpush2.bf16.msra.mxu1 %v3692_v40  ;;  %v3773_v40 = vld [vmem:[#allocation2 + $0x1c8] ss:$16 sps:$4 sm:$0xff]  }
  0xe5   :  { %2081 = vmatprep.subr.bf16.mxu1 %v3700_v57  ;;  %v3776_v57 = vld [vmem:[#allocation2 + $0x3c8] ss:$16 sps:$4 sm:$0xff]  }
  0xe6   :  { %2039 = vmatpush2.bf16.msra.mxu0 %v3695_v59  ;;  %v3781_v59 = vld [vmem:[#allocation2 + $0x1ac] ss:$16 sps:$4 sm:$0xff]  }
  0xe7   :  { %2040 = vmatprep.subr.bf16.mxu0 %v3703_v41  ;;  %v3784_v41 = vld [vmem:[#allocation2 + $0x3ac] ss:$16 sps:$4 sm:$0xff]  }
  0xe8   :  { %2082 = vmatpush2.bf16.msra.mxu1 %v3698_v42  ;;  %v3779_v42 = vld [vmem:[#allocation2 + $0x1a8] ss:$16 sps:$4 sm:$0xff]  }
  0xe9   :  { %2083 = vmatprep.subr.bf16.mxu1 %v3706_v44  ;;  %v3782_v44 = vld [vmem:[#allocation2 + $0x3a8] ss:$16 sps:$4 sm:$0xff]  }
  0xea   :  { %2041 = vmatpush2.bf16.msra.mxu0 %v3701_v43  ;;  %v3787_v43 = vld [vmem:[#allocation2 + $0x18c] ss:$16 sps:$4 sm:$0xff]  }
  0xeb   :  { %2042 = vmatprep.subr.bf16.mxu0 %v3709_v60  ;;  %v3790_v60 = vld [vmem:[#allocation2 + $0x38c] ss:$16 sps:$4 sm:$0xff]  }
  0xec   :  { %2084 = vmatpush2.bf16.msra.mxu1 %v3704_v13  ;;  %v3785_v13 = vld [vmem:[#allocation2 + $0x188] ss:$16 sps:$4 sm:$0xff]  }
  0xed   :  { %2085 = vmatprep.subr.bf16.mxu1 %v3712_v47  ;;  %v3788_v47 = vld [vmem:[#allocation2 + $0x388] ss:$16 sps:$4 sm:$0xff]  }
  0xee   :  { %2043 = vmatpush2.bf16.msra.mxu0 %v3707_v46  ;;  %v3793_v46 = vld [vmem:[#allocation2 + $0x16c] ss:$16 sps:$4 sm:$0xff]  }
  0xef   :  { %2044 = vmatprep.subr.bf16.mxu0 %v3715_v56  ;;  %v3796_v56 = vld [vmem:[#allocation2 + $0x36c] ss:$16 sps:$4 sm:$0xff]  }
  0xf0   :  { %2086 = vmatpush2.bf16.msra.mxu1 %v3710_v61  ;;  %v3791_v61 = vld [vmem:[#allocation2 + $0x168] ss:$16 sps:$4 sm:$0xff]  }
  0xf1   :  { %2087 = vmatprep.subr.bf16.mxu1 %v3718_v48  ;;  %v3794_v48 = vld [vmem:[#allocation2 + $0x368] ss:$16 sps:$4 sm:$0xff]  }
  0xf2   :  { %2045 = vmatpush2.bf16.msra.mxu0 %v3713_v12  ;;  %v3799_v12 = vld [vmem:[#allocation2 + $0x14c] ss:$16 sps:$4 sm:$0xff]  }
  0xf3   :  { %2100 = vmatprep.subr.bf16.mxu0 %v3721_v49  ;;  %v3802_v49 = vld [vmem:[#allocation2 + $0x34c] ss:$16 sps:$4 sm:$0xff]  }
  0xf4   :  { %2088 = vmatpush2.bf16.msra.mxu1 %v3716_v63  ;;  %v3797_v63 = vld [vmem:[#allocation2 + $0x148] ss:$16 sps:$4 sm:$0xff]  }
  0xf5   :  { %2047 = vmatmul.mubr.bf16.vlgmr.msra.gmra.mxu0 %v4326_v50  ;;  %2143 = vmatprep.subr.bf16.mxu1 %v3724_v62  ;;  %v3800_v62 = vld [vmem:[#allocation2 + $0x348] ss:$16 sps:$4 sm:$0xff]  }
  0xf6   :  { %2101 = vmatpush1.bf16.msra.mxu0 %v3719_v0  ;;  %2132 = vmatprep.mubr.bf16.mxu0 %v4283_v52  ;;  %v3745_v52 = vld [vmem:[#allocation2 + $0x6c] ss:$16 sps:$4 sm:$0xff]  }
  0xf7   :  { %2090 = vmatmul.mubr.bf16.vlgmr.msra.gmra.mxu1 %v4328_v5  ;;  %2102 = vmatprep.subr.bf16.mxu0 %v3727_v1  ;;  %v3805_v0 = vld [vmem:[#allocation2 + $0x12c] ss:$16 sps:$4 sm:$0xff]  }
  0xf8   :  { %2144 = vmatpush1.bf16.msra.mxu1 %v3722_v2  ;;  %2175 = vmatprep.mubr.bf16.mxu1 %v4287_v15  ;;  %v3751_v15 = vld [vmem:[#allocation2 + $0x4c] ss:$16 sps:$4 sm:$0xff]   ;;  %v3803_v2 = vld [vmem:[#allocation2 + $0x128] ss:$16 sps:$4 sm:$0xff]  }
  0xf9   :  { %2145 = vmatprep.subr.bf16.mxu1 %v3730_v4  ;;  %v3808_v1 = vld [vmem:[#allocation2 + $0x32c] ss:$16 sps:$4 sm:$0xff]  }
  0xfa   :  { %2103 = vmatpush1.bf16.msra.mxu0 %v3725_v51  ;;  %v3811_v4 = vld [vmem:[#allocation2 + $0x10c] ss:$16 sps:$4 sm:$0xff]   ;;  %v3806_v51 = vld [vmem:[#allocation2 + $0x328] ss:$16 sps:$4 sm:$0xff]  }
  0xfb   :  { %2104 = vmatprep.subr.bf16.mxu0 %v3733_v22  ;;  %v3814_v22 = vld [vmem:[#allocation2 + $0x30c] ss:$16 sps:$4 sm:$0xff]  }
  0xfc   :  { %2146 = vmatpush1.bf16.msra.mxu1 %v3728_v3  ;;  %v3809_v3 = vld [vmem:[#allocation2 + $0x108] ss:$16 sps:$4 sm:$0xff]  }
  0xfd   :  { %2147 = vmatprep.subr.bf16.mxu1 %v3736_v6  ;;  %v3817_v6 = vld [vmem:[#allocation2 + $0x4ec] ss:$16 sps:$4 sm:$0xff]  }
  0xfe   :  { %2105 = vmatpush1.bf16.msra.mxu0 %v3731_v7  ;;  %v3812_v7 = vld [vmem:[#allocation2 + $0x308] ss:$16 sps:$4 sm:$0xff]  }
  0xff   :  { %2106 = vmatprep.subr.bf16.mxu0 %v3739_v8  ;;  %v3820_v8 = vld [vmem:[#allocation2 + $0x6ec] ss:$16 sps:$4 sm:$0xff]  }
 0x100   :  { %2148 = vmatpush1.bf16.msra.mxu1 %v3734_v23  ;;  %v3815_v23 = vld [vmem:[#allocation2 + $0x4e8] ss:$16 sps:$4 sm:$0xff]  }
 0x101   :  { %2149 = vmatprep.subr.bf16.mxu1 %v3742_v24  ;;  %v3823_v24 = vld [vmem:[#allocation2 + $0x4cc] ss:$16 sps:$4 sm:$0xff]  }
 0x102   :  { %2107 = vmatpush1.bf16.msra.mxu0 %v3737_v9  ;;  %v3818_v9 = vld [vmem:[#allocation2 + $0x6e8] ss:$16 sps:$4 sm:$0xff]  }
 0x103   :  { %2108 = vmatprep.subr.bf16.mxu0 %v3745_v52  ;;  %v3826_v52 = vld [vmem:[#allocation2 + $0x6cc] ss:$16 sps:$4 sm:$0xff]  }
 0x104   :  { %2150 = vmatpush1.bf16.msra.mxu1 %v3740_v53  ;;  %v3821_v53 = vld [vmem:[#allocation2 + $0x4c8] ss:$16 sps:$4 sm:$0xff]  }
 0x105   :  { %2151 = vmatprep.subr.bf16.mxu1 %v3748_v54  ;;  %v3829_v54 = vld [vmem:[#allocation2 + $0x4ac] ss:$16 sps:$4 sm:$0xff]  }
 0x106   :  { %2109 = vmatpush1.bf16.msra.mxu0 %v3743_v11  ;;  %v3824_v11 = vld [vmem:[#allocation2 + $0x6c8] ss:$16 sps:$4 sm:$0xff]  }
 0x107   :  { %2110 = vmatprep.subr.bf16.mxu0 %v3751_v15  ;;  %v3832_v15 = vld [vmem:[#allocation2 + $0x6ac] ss:$16 sps:$4 sm:$0xff]  }
 0x108   :  { %2152 = vmatpush1.bf16.msra.mxu1 %v3746_v18  ;;  %v3827_v18 = vld [vmem:[#allocation2 + $0x4a8] ss:$16 sps:$4 sm:$0xff]  }
 0x109   :  { %2153 = vmatprep.subr.bf16.mxu1 %v3754_v25  ;;  %v3830_v25 = vld [vmem:[#allocation2 + $0x6a8] ss:$16 sps:$4 sm:$0xff]  }
 0x10a   :  { %2111 = vmatpush1.bf16.msra.mxu0 %v3749_v28  ;;  %v3838_v28 = vld [vmem:[#allocation2 + $0x68c] ss:$16 sps:$4 sm:$0xff]  }
 0x10b   :  { %2112 = vmatprep.subr.bf16.mxu0 %v3757_v29  ;;  %v3836_v29 = vld [vmem:[#allocation2 + $0x688] ss:$16 sps:$4 sm:$0xff]  }
 0x10c   :  { %2154 = vmatpush1.bf16.msra.mxu1 %v3752_v30  ;;  %v3844_v30 = vld [vmem:[#allocation2 + $0x66c] ss:$16 sps:$4 sm:$0xff]  }
 0x10d   :  { %2155 = vmatprep.subr.bf16.mxu1 %v3760_v31  ;;  %v3847_v31 = vld [vmem:[#allocation2 + $0x44c] ss:$16 sps:$4 sm:$0xff]  }
 0x10e   :  { %2113 = vmatpush1.bf16.msra.mxu0 %v3755_v20  ;;  %v3842_v20 = vld [vmem:[#allocation2 + $0x668] ss:$16 sps:$4 sm:$0xff]  }
 0x10f   :  { %2114 = vmatprep.subr.bf16.mxu0 %v3763_v26  ;;  %v3850_v26 = vld [vmem:[#allocation2 + $0x64c] ss:$16 sps:$4 sm:$0xff]  }
 0x110   :  { %2156 = vmatpush1.bf16.msra.mxu1 %v3758_v21  ;;  %v3845_v21 = vld [vmem:[#allocation2 + $0x448] ss:$16 sps:$4 sm:$0xff]  }
 0x111   :  { %2157 = vmatprep.subr.bf16.mxu1 %v3766_v32  ;;  %v3853_v32 = vld [vmem:[#allocation2 + $0x42c] ss:$16 sps:$4 sm:$0xff]  }
 0x112   :  { %2115 = vmatpush1.bf16.msra.mxu0 %v3761_v33  ;;  %v3848_v33 = vld [vmem:[#allocation2 + $0x648] ss:$16 sps:$4 sm:$0xff]  }
 0x113   :  { %2116 = vmatprep.subr.bf16.mxu0 %v3769_v34  ;;  %v3856_v34 = vld [vmem:[#allocation2 + $0x62c] ss:$16 sps:$4 sm:$0xff]  }
 0x114   :  { %2158 = vmatpush1.bf16.msra.mxu1 %v3764_v36  ;;  %v3851_v36 = vld [vmem:[#allocation2 + $0x428] ss:$16 sps:$4 sm:$0xff]  }
 0x115   :  { %2159 = vmatprep.subr.bf16.mxu1 %v3772_v37  ;;  %v3859_v37 = vld [vmem:[#allocation2 + $0x40c] ss:$16 sps:$4 sm:$0xff]  }
 0x116   :  { %2117 = vmatpush2.bf16.msra.mxu0 %v3767_v58  ;;  %v3854_v58 = vld [vmem:[#allocation2 + $0x628] ss:$16 sps:$4 sm:$0xff]  }
 0x117   :  { %2118 = vmatprep.subr.bf16.mxu0 %v3775_v38  ;;  %v3862_v38 = vld [vmem:[#allocation2 + $0x60c] ss:$16 sps:$4 sm:$0xff]  }
 0x118   :  { %2160 = vmatpush2.bf16.msra.mxu1 %v3770_v39  ;;  %v3857_v39 = vld [vmem:[#allocation2 + $0x408] ss:$16 sps:$4 sm:$0xff]  }
 0x119   :  { %2161 = vmatprep.subr.bf16.mxu1 %v3778_v27  ;;  %v3865_v27 = vld [vmem:[#allocation2 + $0x5ec] ss:$16 sps:$4 sm:$0xff]  }
 0x11a   :  { %2119 = vmatpush2.bf16.msra.mxu0 %v3773_v40  ;;  %v3860_v40 = vld [vmem:[#allocation2 + $0x608] ss:$16 sps:$4 sm:$0xff]  }
 0x11b   :  { %2120 = vmatprep.subr.bf16.mxu0 %v3781_v59  ;;  %v3868_v59 = vld [vmem:[#allocation2 + $0x7ec] ss:$16 sps:$4 sm:$0xff]  }
 0x11c   :  { %2162 = vmatpush2.bf16.msra.mxu1 %v3776_v57  ;;  %v3863_v57 = vld [vmem:[#allocation2 + $0x5e8] ss:$16 sps:$4 sm:$0xff]  }
 0x11d   :  { %2163 = vmatprep.subr.bf16.mxu1 %v3784_v41  ;;  %v3871_v41 = vld [vmem:[#allocation2 + $0x5cc] ss:$16 sps:$4 sm:$0xff]  }
 0x11e   :  { %2121 = vmatpush2.bf16.msra.mxu0 %v3779_v42  ;;  %v3866_v42 = vld [vmem:[#allocation2 + $0x7e8] ss:$16 sps:$4 sm:$0xff]  }
 0x11f   :  { %2122 = vmatprep.subr.bf16.mxu0 %v3787_v43  ;;  %v3874_v43 = vld [vmem:[#allocation2 + $0x7cc] ss:$16 sps:$4 sm:$0xff]  }
 0x120   :  { %2164 = vmatpush2.bf16.msra.mxu1 %v3782_v44  ;;  %v3869_v44 = vld [vmem:[#allocation2 + $0x5c8] ss:$16 sps:$4 sm:$0xff]  }
 0x121   :  { %2165 = vmatprep.subr.bf16.mxu1 %v3790_v60  ;;  %v3877_v60 = vld [vmem:[#allocation2 + $0x5ac] ss:$16 sps:$4 sm:$0xff]  }
 0x122   :  { %2123 = vmatpush2.bf16.msra.mxu0 %v3785_v13  ;;  %v3872_v13 = vld [vmem:[#allocation2 + $0x7c8] ss:$16 sps:$4 sm:$0xff]  }
 0x123   :  { %2124 = vmatprep.subr.bf16.mxu0 %v3793_v46  ;;  %v3880_v46 = vld [vmem:[#allocation2 + $0x7ac] ss:$16 sps:$4 sm:$0xff]  }
 0x124   :  { %2166 = vmatpush2.bf16.msra.mxu1 %v3788_v47  ;;  %v3875_v47 = vld [vmem:[#allocation2 + $0x5a8] ss:$16 sps:$4 sm:$0xff]  }
 0x125   :  { %2167 = vmatprep.subr.bf16.mxu1 %v3796_v56  ;;  %v3883_v56 = vld [vmem:[#allocation2 + $0x58c] ss:$16 sps:$4 sm:$0xff]  }
 0x126   :  { %2125 = vmatpush2.bf16.msra.mxu0 %v3791_v61  ;;  %v3878_v61 = vld [vmem:[#allocation2 + $0x7a8] ss:$16 sps:$4 sm:$0xff]  }
 0x127   :  { %2126 = vmatprep.subr.bf16.mxu0 %v3799_v12  ;;  %v3886_v12 = vld [vmem:[#allocation2 + $0x78c] ss:$16 sps:$4 sm:$0xff]  }
 0x128   :  { %2168 = vmatpush2.bf16.msra.mxu1 %v3794_v48  ;;  %v3881_v48 = vld [vmem:[#allocation2 + $0x588] ss:$16 sps:$4 sm:$0xff]  }
 0x129   :  { %2169 = vmatprep.subr.bf16.mxu1 %v3802_v49  ;;  %v3889_v49 = vld [vmem:[#allocation2 + $0x56c] ss:$16 sps:$4 sm:$0xff]  }
 0x12a   :  { %2127 = vmatpush2.bf16.msra.mxu0 %v3797_v63  ;;  %v3884_v63 = vld [vmem:[#allocation2 + $0x788] ss:$16 sps:$4 sm:$0xff]  }
 0x12b   :  { %2128 = vmatprep.subr.bf16.mxu0 %v3805_v0  ;;  %v3892_v0 = vld [vmem:[#allocation2 + $0x76c] ss:$16 sps:$4 sm:$0xff]  }
 0x12c   :  { %2170 = vmatpush2.bf16.msra.mxu1 %v3800_v62  ;;  %v3887_v62 = vld [vmem:[#allocation2 + $0x568] ss:$16 sps:$4 sm:$0xff]  }
 0x12d   :  { %2171 = vmatprep.subr.bf16.mxu1 %v3808_v1  ;;  %v3895_v1 = vld [vmem:[#allocation2 + $0x54c] ss:$16 sps:$4 sm:$0xff]  }
 0x12e   :  { %2129 = vmatpush2.bf16.msra.mxu0 %v3803_v2  ;;  %v3890_v2 = vld [vmem:[#allocation2 + $0x768] ss:$16 sps:$4 sm:$0xff]  }
 0x12f   :  { %2130 = vmatprep.subr.bf16.mxu0 %v3811_v4  ;;  %v3898_v4 = vld [vmem:[#allocation2 + $0x74c] ss:$16 sps:$4 sm:$0xff]  }
 0x130   :  { %2172 = vmatpush2.bf16.msra.mxu1 %v3806_v51  ;;  %v3893_v51 = vld [vmem:[#allocation2 + $0x548] ss:$16 sps:$4 sm:$0xff]  }
 0x131   :  { %2173 = vmatprep.subr.bf16.mxu1 %v3814_v22  ;;  %v3901_v22 = vld [vmem:[#allocation2 + $0x52c] ss:$16 sps:$4 sm:$0xff]  }
 0x132   :  { %2131 = vmatpush2.bf16.msra.mxu0 %v3809_v3  ;;  %v3896_v3 = vld [vmem:[#allocation2 + $0x748] ss:$16 sps:$4 sm:$0xff]  }
 0x133   :  { %2186 = vmatprep.subr.bf16.mxu0 %v3817_v6  ;;  %v3904_v6 = vld [vmem:[#allocation2 + $0x72c] ss:$16 sps:$4 sm:$0xff]  }
 0x134   :  { %2174 = vmatpush2.bf16.msra.mxu1 %v3812_v7  ;;  %v3899_v7 = vld [vmem:[#allocation2 + $0x528] ss:$16 sps:$4 sm:$0xff]  }
 0x135   :  { %2133 = vmatmul.mubr.bf16.vlgmr.msra.gmra.mxu0 %v4289_v10  ;;  %2229 = vmatprep.subr.bf16.mxu1 %v3820_v8  ;;  %v3835_v10 = vld [vmem:[#allocation2 + $0x48c] ss:$16 sps:$4 sm:$0xff]  }
 0x136   :  { %2187 = vmatpush1.bf16.msra.mxu0 %v3815_v23  ;;  %2218 = vmatprep.mubr.bf16.mxu0 %v4310_v35  ;;  %v3833_v35 = vld [vmem:[#allocation2 + $0x488] ss:$16 sps:$4 sm:$0xff]   ;;  %v3907_v8 = vld [vmem:[#allocation2 + $0x50c] ss:$16 sps:$4 sm:$0xff]  }
 0x137   :  { %2176 = vmatmul.mubr.bf16.vlgmr.msra.gmra.mxu1 %v4298_v55  ;;  %2188 = vmatprep.subr.bf16.mxu0 %v3823_v24  ;;  %v3841_v55 = vld [vmem:[#allocation2 + $0x46c] ss:$16 sps:$4 sm:$0xff]   ;;  %v3902_v23 = vld [vmem:[#allocation2 + $0x728] ss:$16 sps:$4 sm:$0xff]  }
 0x138   :  { %2230 = vmatpush1.bf16.msra.mxu1 %v3818_v9  ;;  %2261 = vmatprep.mubr.bf16.mxu1 %v4320_v45  ;;  %v3839_v45 = vld [vmem:[#allocation2 + $0x468] ss:$16 sps:$4 sm:$0xff]   ;;  %v3910_v24 = vld [vmem:[#allocation2 + $0x70c] ss:$16 sps:$4 sm:$0xff]  }
 0x139   :  { %2231 = vmatprep.subr.bf16.mxu1 %v3826_v52  ;;  %v3905_v9 = vld [vmem:[#allocation2 + $0x508] ss:$16 sps:$4 sm:$0xff]   ;;  %v3913_v52 = vld [vmem:[#allocation4 + $0x74] ss:$8 sps:$4 sm:$0xff]  }
 0x13a   :  { %2189 = vmatpush1.bf16.msra.mxu0 %v3821_v53  ;;  %v3908_v53 = vld [vmem:[#allocation2 + $0x708] ss:$16 sps:$4 sm:$0xff]  }
 0x13b   :  { %2190 = vmatprep.subr.bf16.mxu0 %v3829_v54  ;;  %v3911_v54 = vld [vmem:[#allocation4 + $0x70] ss:$8 sps:$4 sm:$0xff]  }
 0x13c   :  { %2232 = vmatpush1.bf16.msra.mxu1 %v3824_v11  ;;  %v3916_v11 = vld [vmem:[#allocation4 + $0x64] ss:$8 sps:$4 sm:$0xff]  }
 0x13d   :  { %2233 = vmatprep.subr.bf16.mxu1 %v3832_v15  ;;  %v3914_v15 = vld [vmem:[#allocation4 + $0x60] ss:$8 sps:$4 sm:$0xff]  }
 0x13e   :  { %2191 = vmatpush1.bf16.msra.mxu0 %v3827_v18  ;;  %v3919_v18 = vld [vmem:[#allocation4 + $0x54] ss:$8 sps:$4 sm:$0xff]  }
 0x13f   :  { %2192 = vmatprep.subr.bf16.mxu0 %v3835_v10  ;;  %v3917_v10 = vld [vmem:[#allocation4 + $0x50] ss:$8 sps:$4 sm:$0xff]  }
 0x140   :  { %2234 = vmatpush1.bf16.msra.mxu1 %v3830_v25  ;;  %v3922_v25 = vld [vmem:[#allocation4 + $0x44] ss:$8 sps:$4 sm:$0xff]  }
 0x141   :  { %2235 = vmatprep.subr.bf16.mxu1 %v3838_v28  ;;  %v3920_v28 = vld [vmem:[#allocation4 + $0x40] ss:$8 sps:$4 sm:$0xff]  }
 0x142   :  { %2193 = vmatpush1.bf16.msra.mxu0 %v3833_v35  ;;  %v3959_v35 = vld [vmem:[#allocation4 + $0x170] ss:$8 sps:$4 sm:$0xff]  }
 0x143   :  { %2194 = vmatprep.subr.bf16.mxu0 %v3841_v55  ;;  %v3961_v55 = vld [vmem:[#allocation4 + $0x174] ss:$8 sps:$4 sm:$0xff]  }
 0x144   :  { %2236 = vmatpush1.bf16.msra.mxu1 %v3836_v29  ;;  %v3925_v29 = vld [vmem:[#allocation4 + $0x34] ss:$8 sps:$4 sm:$0xff]  }
 0x145   :  { %2237 = vmatprep.subr.bf16.mxu1 %v3844_v30  ;;  %v3964_v30 = vld [vmem:[#allocation4 + $0x164] ss:$8 sps:$4 sm:$0xff]  }
 0x146   :  { %2195 = vmatpush1.bf16.msra.mxu0 %v3839_v45  ;;  %v3923_v45 = vld [vmem:[#allocation4 + $0x30] ss:$8 sps:$4 sm:$0xff]  }
 0x147   :  { %2196 = vmatprep.subr.bf16.mxu0 %v3847_v31  ;;  %v3928_v31 = vld [vmem:[#allocation4 + $0x24] ss:$8 sps:$4 sm:$0xff]  }
 0x148   :  { %2238 = vmatpush1.bf16.msra.mxu1 %v3842_v20  ;;  %v3965_v20 = vld [vmem:[#allocation4 + $0x150] ss:$8 sps:$4 sm:$0xff]  }
 0x149   :  { %2239 = vmatprep.subr.bf16.mxu1 %v3850_v26  ;;  %v3926_v26 = vld [vmem:[#allocation4 + $0x20] ss:$8 sps:$4 sm:$0xff]  }
 0x14a   :  { %2197 = vmatpush1.bf16.msra.mxu0 %v3845_v21  ;;  %v3970_v21 = vld [vmem:[#allocation4 + $0x144] ss:$8 sps:$4 sm:$0xff]  }
 0x14b   :  { %2198 = vmatprep.subr.bf16.mxu0 %v3853_v32  ;;  %v3931_v32 = vld [vmem:[#allocation4 + $0x14] ss:$8 sps:$4 sm:$0xff]  }
 0x14c   :  { %2240 = vmatpush1.bf16.msra.mxu1 %v3848_v33  ;;  %v3968_v33 = vld [vmem:[#allocation4 + $0x140] ss:$8 sps:$4 sm:$0xff]  }
 0x14d   :  { %2241 = vmatprep.subr.bf16.mxu1 %v3856_v34  ;;  %v3929_v34 = vld [vmem:[#allocation4 + $0x10] ss:$8 sps:$4 sm:$0xff]  }
 0x14e   :  { %2199 = vmatpush1.bf16.msra.mxu0 %v3851_v36  ;;  %v3973_v36 = vld [vmem:[#allocation4 + $0x134] ss:$8 sps:$4 sm:$0xff]  }
 0x14f   :  { %2200 = vmatprep.subr.bf16.mxu0 %v3859_v37  ;;  %v3934_v37 = vld [vmem:[#allocation4 + $0x4] ss:$8 sps:$4 sm:$0xff]  }
 0x150   :  { %2242 = vmatpush1.bf16.msra.mxu1 %v3854_v58  ;;  %v3971_v58 = vld [vmem:[#allocation4 + $0x130] ss:$8 sps:$4 sm:$0xff]  }
 0x151   :  { %2243 = vmatprep.subr.bf16.mxu1 %v3862_v38  ;;  %v3932_v38 = vld [vmem:[#allocation4] ss:$8 sps:$4 sm:$0xff]  }
 0x152   :  { %2201 = vmatpush1.bf16.msra.mxu0 %v3857_v39  ;;  %v3976_v39 = vld [vmem:[#allocation4 + $0x124] ss:$8 sps:$4 sm:$0xff]  }
 0x153   :  { %2202 = vmatprep.subr.bf16.mxu0 %v3865_v27  ;;  %v3937_v27 = vld [vmem:[#allocation4 + $0xf4] ss:$8 sps:$4 sm:$0xff]  }
 0x154   :  { %2244 = vmatpush1.bf16.msra.mxu1 %v3860_v40  ;;  %v3974_v40 = vld [vmem:[#allocation4 + $0x120] ss:$8 sps:$4 sm:$0xff]  }
 0x155   :  { %2245 = vmatprep.subr.bf16.mxu1 %v3868_v59  ;;  %v3935_v59 = vld [vmem:[#allocation4 + $0xf0] ss:$8 sps:$4 sm:$0xff]  }
 0x156   :  { %2203 = vmatpush2.bf16.msra.mxu0 %v3863_v57  ;;  %v3979_v57 = vld [vmem:[#allocation4 + $0x114] ss:$8 sps:$4 sm:$0xff]  }
 0x157   :  { %2204 = vmatprep.subr.bf16.mxu0 %v3871_v41  ;;  %v3940_v41 = vld [vmem:[#allocation4 + $0xe4] ss:$8 sps:$4 sm:$0xff]  }
 0x158   :  { %2246 = vmatpush2.bf16.msra.mxu1 %v3866_v42  ;;  %v3977_v42 = vld [vmem:[#allocation4 + $0x110] ss:$8 sps:$4 sm:$0xff]  }
 0x159   :  { %2247 = vmatprep.subr.bf16.mxu1 %v3874_v43  ;;  %v3938_v43 = vld [vmem:[#allocation4 + $0xe0] ss:$8 sps:$4 sm:$0xff]  }
 0x15a   :  { %2205 = vmatpush2.bf16.msra.mxu0 %v3869_v44  ;;  %v3982_v44 = vld [vmem:[#allocation4 + $0x104] ss:$8 sps:$4 sm:$0xff]  }
 0x15b   :  { %2206 = vmatprep.subr.bf16.mxu0 %v3877_v60  ;;  %v3943_v60 = vld [vmem:[#allocation4 + $0xd4] ss:$8 sps:$4 sm:$0xff]  }
 0x15c   :  { %2248 = vmatpush2.bf16.msra.mxu1 %v3872_v13  ;;  %v3980_v13 = vld [vmem:[#allocation4 + $0x100] ss:$8 sps:$4 sm:$0xff]  }
 0x15d   :  { %2249 = vmatprep.subr.bf16.mxu1 %v3880_v46  ;;  %v3941_v46 = vld [vmem:[#allocation4 + $0xd0] ss:$8 sps:$4 sm:$0xff]  }
 0x15e   :  { %2207 = vmatpush2.bf16.msra.mxu0 %v3875_v47  ;;  %v3985_v47 = vld [vmem:[#allocation4 + $0x1f4] ss:$8 sps:$4 sm:$0xff]  }
 0x15f   :  { %2208 = vmatprep.subr.bf16.mxu0 %v3883_v56  ;;  %v3946_v56 = vld [vmem:[#allocation4 + $0xc4] ss:$8 sps:$4 sm:$0xff]  }
 0x160   :  { %2250 = vmatpush2.bf16.msra.mxu1 %v3878_v61  ;;  %v3983_v61 = vld [vmem:[#allocation4 + $0x1f0] ss:$8 sps:$4 sm:$0xff]  }
 0x161   :  { %2251 = vmatprep.subr.bf16.mxu1 %v3886_v12  ;;  %v3944_v12 = vld [vmem:[#allocation4 + $0xc0] ss:$8 sps:$4 sm:$0xff]  }
 0x162   :  { %2209 = vmatpush2.bf16.msra.mxu0 %v3881_v48  ;;  %v3988_v48 = vld [vmem:[#allocation4 + $0x1e4] ss:$8 sps:$4 sm:$0xff]  }
 0x163   :  { %2210 = vmatprep.subr.bf16.mxu0 %v3889_v49  ;;  %v3949_v49 = vld [vmem:[#allocation4 + $0xb4] ss:$8 sps:$4 sm:$0xff]  }
 0x164   :  { %2252 = vmatpush2.bf16.msra.mxu1 %v3884_v63  ;;  %v3986_v63 = vld [vmem:[#allocation4 + $0x1e0] ss:$8 sps:$4 sm:$0xff]  }
 0x165   :  { %2253 = vmatprep.subr.bf16.mxu1 %v3892_v0  ;;  %v3947_v0 = vld [vmem:[#allocation4 + $0xb0] ss:$8 sps:$4 sm:$0xff]  }
 0x166   :  { %2211 = vmatpush2.bf16.msra.mxu0 %v3887_v62  ;;  %v3991_v62 = vld [vmem:[#allocation4 + $0x1d4] ss:$8 sps:$4 sm:$0xff]  }
 0x167   :  { %2212 = vmatprep.subr.bf16.mxu0 %v3895_v1  ;;  %v3952_v1 = vld [vmem:[#allocation4 + $0xa4] ss:$8 sps:$4 sm:$0xff]  }
 0x168   :  { %2254 = vmatpush2.bf16.msra.mxu1 %v3890_v2  ;;  %v3989_v2 = vld [vmem:[#allocation4 + $0x1d0] ss:$8 sps:$4 sm:$0xff]  }
 0x169   :  { %2255 = vmatprep.subr.bf16.mxu1 %v3898_v4  ;;  %v3950_v4 = vld [vmem:[#allocation4 + $0xa0] ss:$8 sps:$4 sm:$0xff]  }
 0x16a   :  { %2213 = vmatpush2.bf16.msra.mxu0 %v3893_v51  ;;  %v3994_v51 = vld [vmem:[#allocation4 + $0x1c4] ss:$8 sps:$4 sm:$0xff]  }
 0x16b   :  { %2214 = vmatprep.subr.bf16.mxu0 %v3901_v22 }
 0x16c   :  { %2256 = vmatpush2.bf16.msra.mxu1 %v3896_v3  ;;  %v3955_v3 = vld [vmem:[#allocation4 + $0x94] ss:$8 sps:$4 sm:$0xff]  }
 0x16d   :  { %2257 = vmatprep.subr.bf16.mxu1 %v3904_v6 }
 0x16e   :  { %2215 = vmatpush2.bf16.msra.mxu0 %v3899_v7  ;;  %v3992_v7 = vld [vmem:[#allocation4 + $0x1c0] ss:$8 sps:$4 sm:$0xff]  }
 0x16f   :  { %2216 = vmatprep.subr.bf16.mxu0 %v3907_v8  ;;  %v3953_v8 = vld [vmem:[#allocation4 + $0x90] ss:$8 sps:$4 sm:$0xff]  }
 0x170   :  { %2258 = vmatpush2.bf16.msra.mxu1 %v3902_v23 }
 0x171   :  { %2259 = vmatprep.subr.bf16.mxu1 %v3910_v24  ;;  %v3958_v24 = vld [vmem:[#allocation4 + $0x84] ss:$8 sps:$4 sm:$0xff]  }
 0x172   :  { %2217 = vmatpush2.bf16.msra.mxu0 %v3905_v9  ;;  %v4343_v9 = vld [vmem:[%s4403_s1 + $0x8] sm:$0xf] }
 0x173   :  { %2680 = vmatprep.subr.bf16.mxu0 %v3913_v52 }
 0x174   :  { %2260 = vmatpush2.bf16.msra.mxu1 %v3908_v53  ;;  %v635_v53 = vrot.slane %v4343_v9, %v4186_v16 }
 0x175   :  { %2219 = vmatmul.mubr.bf16.vlgmr.msra.gmra.mxu0 %v4326_v50  ;;  %2723 = vmatprep.subr.bf16.mxu1 %v3961_v55  ;;  %v3962_v50 = vld [vmem:[#allocation4 + $0x160] ss:$8 sps:$4 sm:$0xff]   ;;  %v1962_v22 = vpop.f32.mrf.mxu0 }
 0x176   :  { %2681 = vmatpush1.bf16.msra.mxu0 %v3911_v54  ;;  %v3956_v54 = vld [vmem:[#allocation4 + $0x80] ss:$8 sps:$4 sm:$0xff]  }
 0x177   :  { %2262 = vmatmul.mubr.bf16.vlgmr.msra.gmra.mxu1 %v4328_v5  ;;  %2682 = vmatprep.subr.bf16.mxu0 %v3916_v11  ;;  %v3967_v5 = vld [vmem:[#allocation4 + $0x154] ss:$8 sps:$4 sm:$0xff]   ;;  %v2005_v6 = vpop.f32.mrf.mxu1  ;;  %v1964_v23 = vpop.f32.mrf.mxu0  ;;  %v631_v11 = vrot.slane %v4343_v9, %v4190_v19 }
 0x178   :  { %2724 = vmatpush1.bf16.msra.mxu1 %v3959_v35 }
 0x179   :  { %2725 = vmatprep.subr.bf16.mxu1 %v3964_v30  ;;  %v2007_v52 = vpop.f32.mrf.mxu1 }
 0x17a   :  { %2683 = vmatpush1.bf16.msra.mxu0 %v3914_v15  ;;  %v1966_v15 = vpop.f32.mrf.mxu0 }
 0x17b   :  { %2684 = vmatprep.subr.bf16.mxu0 %v3919_v18  ;;  %v2009_v18 = vpop.f32.mrf.mxu1  ;;  %v1967_v35 = vadd.f32 %v1966_v15, %v631_v11 }
 0x17c   :  { %2726 = vmatpush1.bf16.msra.mxu1 %v3962_v50 }
 0x17d   :  { %2727 = vmatprep.subr.bf16.mxu1 %v3967_v5  ;;  %v2011_v55 = vpop.f32.mrf.mxu1 }
 0x17e   :  { %2685 = vmatpush1.bf16.msra.mxu0 %v3917_v10  ;;  %v1965_v10 = vadd.f32 %v1964_v23, %v635_v53 }
 0x17f   :  { %2686 = vmatprep.subr.bf16.mxu0 %v3922_v25  ;;  %v1963_v25 = vadd.f32 %v1962_v22, %v631_v11  ;;  %v4013_v22 = vld [vmem:[#allocation6 + $0x60] sm:$0xff]  }
 0x180   :  { %2728 = vmatpush1.bf16.msra.mxu1 %v3965_v20  ;;  %v2008_v30 = vadd.f32 %v2007_v52, %v1965_v10  ;;  %v2010_v20 = vadd.f32 %v2009_v18, %v1967_v35 }
 0x181   :  { %2729 = vmatprep.subr.bf16.mxu1 %v3970_v21 }
 0x182   :  { %2687 = vmatpush1.bf16.msra.mxu0 %v3920_v28  ;;  %v1968_v28 = vpop.f32.mrf.mxu0 }
 0x183   :  { %2688 = vmatprep.subr.bf16.mxu0 %v3925_v29  ;;  %v1969_v50 = vadd.f32 %v1968_v28, %v635_v53  ;;  %v643_v53 = vrot.slane %v4343_v9, %v4188_v17 }
 0x184   :  { %2730 = vmatpush1.bf16.msra.mxu1 %v3968_v33 }
 0x185   :  { %2731 = vmatprep.subr.bf16.mxu1 %v3973_v36 }
 0x186   :  { %2689 = vmatpush1.bf16.msra.mxu0 %v3923_v45  ;;  %v2006_v45 = vadd.f32 %v2005_v6, %v1963_v25  ;;  %v4015_v6 = vld [vmem:[#allocation6 + $0x58] sm:$0xff]  }
 0x187   :  { %2690 = vmatprep.subr.bf16.mxu0 %v3928_v31 }
 0x188   :  { %2732 = vmatpush1.bf16.msra.mxu1 %v3971_v58  ;;  %v3997_v58 = vld [vmem:[#allocation4 + $0x1b4] ss:$8 sps:$4 sm:$0xff]  }
 0x189   :  { %2733 = vmatprep.subr.bf16.mxu1 %v3976_v39 }
 0x18a   :  { %2691 = vmatpush1.bf16.msra.mxu0 %v3926_v26 }
 0x18b   :  { %2692 = vmatprep.subr.bf16.mxu0 %v3931_v32 }
 0x18c   :  { %2734 = vmatpush1.bf16.msra.mxu1 %v3974_v40 }
 0x18d   :  { %2735 = vmatprep.subr.bf16.mxu1 %v3979_v57 }
 0x18e   :  { %2693 = vmatpush1.bf16.msra.mxu0 %v3929_v34  ;;  %v2012_v34 = vadd.f32 %v2011_v55, %v1969_v50 }
 0x18f   :  { %2694 = vmatprep.subr.bf16.mxu0 %v3934_v37  ;;  %v3995_v37 = vld [vmem:[#allocation4 + $0x1b0] ss:$8 sps:$4 sm:$0xff]  }
 0x190   :  { %2736 = vmatpush1.bf16.msra.mxu1 %v3977_v42 }
 0x191   :  { %2737 = vmatprep.subr.bf16.mxu1 %v3982_v44 }
 0x192   :  { %2695 = vmatpush1.bf16.msra.mxu0 %v3932_v38 }
 0x193   :  { %2696 = vmatprep.subr.bf16.mxu0 %v3937_v27 }
 0x194   :  { %2738 = vmatpush1.bf16.msra.mxu1 %v3980_v13  ;;  %v3998_v13 = vld [vmem:[#allocation4 + $0x1a0] ss:$8 sps:$4 sm:$0xff]  }
 0x195   :  { %2739 = vmatprep.subr.bf16.mxu1 %v3985_v47 }
 0x196   :  { %2697 = vmatpush2.bf16.msra.mxu0 %v3935_v59 }
 0x197   :  { %2698 = vmatprep.subr.bf16.mxu0 %v3940_v41 }
 0x198   :  { %2740 = vmatpush2.bf16.msra.mxu1 %v3983_v61  ;;  %v4003_v61 = vld [vmem:[#allocation4 + $0x194] ss:$8 sps:$4 sm:$0xff]  }
 0x199   :  { %2741 = vmatprep.subr.bf16.mxu1 %v3988_v48  ;;  %v4001_v48 = vld [vmem:[#allocation4 + $0x190] ss:$8 sps:$4 sm:$0xff]  }
 0x19a   :  { %2699 = vmatpush2.bf16.msra.mxu0 %v3938_v43 }
 0x19b   :  { %2700 = vmatprep.subr.bf16.mxu0 %v3943_v60 }
 0x19c   :  { %2742 = vmatpush2.bf16.msra.mxu1 %v3986_v63  ;;  %v4004_v63 = vld [vmem:[#allocation4 + $0x180] ss:$8 sps:$4 sm:$0xff]  }
 0x19d   :  { %2743 = vmatprep.subr.bf16.mxu1 %v3991_v62  ;;  %v4008_v62 = vld [vmem:[#allocation6 + $0x38] sm:$0xff]  }
 0x19e   :  { %2701 = vmatpush2.bf16.msra.mxu0 %v3941_v46  ;;  %v4000_v46 = vld [vmem:[#allocation4 + $0x1a4] ss:$8 sps:$4 sm:$0xff]  }
 0x19f   :  { %2702 = vmatprep.subr.bf16.mxu0 %v3946_v56 }
 0x1a0   :  { %2744 = vmatpush2.bf16.msra.mxu1 %v3989_v2  ;;  %v4010_v2 = vld [vmem:[#allocation6 + $0x30] sm:$0xff]  }
 0x1a1   :  { %2745 = vmatprep.subr.bf16.mxu1 %v3994_v51  ;;  %v4012_v51 = vld [vmem:[#allocation6 + $0x28] sm:$0xff]  }
 0x1a2   :  { %2703 = vmatpush2.bf16.msra.mxu0 %v3944_v12 }
 0x1a3   :  { %2704 = vmatprep.subr.bf16.mxu0 %v3949_v49  ;;  %v4006_v49 = vld [vmem:[#allocation4 + $0x184] ss:$8 sps:$4 sm:$0xff]  }
 0x1a4   :  { %2746 = vmatpush2.bf16.msra.mxu1 %v3992_v7  ;;  %v4016_v7 = vld [vmem:[#allocation6 + $0x18] sm:$0xff]  }
 0x1a5   :  { %2747 = vmatprep.subr.bf16.mxu1 %v3997_v58 }
 0x1a6   :  { %2705 = vmatpush2.bf16.msra.mxu0 %v3947_v0  ;;  %v4007_v0 = vld [vmem:[#allocation6 + $0x78] sm:$0xff]  }
 0x1a7   :  { %2706 = vmatprep.subr.bf16.mxu0 %v3952_v1  ;;  %v4009_v1 = vld [vmem:[#allocation6 + $0x70] sm:$0xff]  }
 0x1a8   :  { %2748 = vmatpush2.bf16.msra.mxu1 %v3995_v37 }
 0x1a9   :  { %2749 = vmatprep.subr.bf16.mxu1 %v4000_v46  ;;  %v4021_v46 = vld [vmem:[#allocation6 + $0x40] sm:$0xff]  }
 0x1aa   :  { %2707 = vmatpush2.bf16.msra.mxu0 %v3950_v4  ;;  %v4011_v4 = vld [vmem:[#allocation6 + $0x68] sm:$0xff]  }
 0x1ab   :  { %2708 = vmatprep.subr.bf16.mxu0 %v3955_v3  ;;  %v4014_v3 = vld [vmem:[#allocation6 + $0x20] sm:$0xff]  }
 0x1ac   :  { %2750 = vmatpush2.bf16.msra.mxu1 %v3998_v13  ;;  %v4020_v13 = vld [vmem:[#allocation6 + $0x8] sm:$0xff]  }
 0x1ad   :  { %2751 = vmatprep.subr.bf16.mxu1 %v4003_v61  ;;  %v4106_v61 = vmov 0.0  }
 0x1ae   :  { %2709 = vmatpush2.bf16.msra.mxu0 %v3953_v8 }
 0x1af   :  { %2710 = vmatprep.subr.bf16.mxu0 %v3958_v24 }
 0x1b0   :  { %2752 = vmatpush2.bf16.msra.mxu1 %v4001_v48  ;;  %v4025_v48 = vld [vmem:[%s4408_s6 + $0x28] sm:$0xff]  }
 0x1b1   :  { %2753 = vmatprep.subr.bf16.mxu1 %v4006_v49  ;;  %v4026_v49 = vld [vmem:[%s4408_s6 + $0x20] sm:$0xff]  }
 0x1b2   :  { %2711 = vmatpush2.bf16.msra.mxu0 %v3956_v54  ;;  %v639_v54 = vrot.slane %v4343_v9, %v4184_v14 }
 0x1b3   :  { %3460 = vmatprep.subr.bf16.mxu0 %v4007_v0 }
 0x1b4   :  { %2754 = vmatpush2.bf16.msra.mxu1 %v4004_v63 }
 0x1b5   :  { %v2048_v29 = vpop.f32.mrf.mxu0  ;;  %3491 = vmatprep.subr.bf16.mxu1 %v4106_v61 }
 0x1b6   :  { %v2049_v21 = vadd.f32 %v2048_v29, %v2006_v45 }
 0x1b7   :  { %v2091_v5 = vpop.f32.mrf.mxu1  ;;  %v2050_v31 = vpop.f32.mrf.mxu0 }
 0x1b8   :  { %v2051_v26 = vadd.f32 %v2050_v31, %v2008_v30  ;;  %v2092_v57 = vadd.f32 %v2091_v5, %v2049_v21 }
 0x1b9   :  { %v2093_v32 = vpop.f32.mrf.mxu1  ;;  %v2052_v33 = vpop.f32.mrf.mxu0 }
 0x1ba   :  { %v2053_v36 = vadd.f32 %v2052_v33, %v2010_v20  ;;  %v2094_v27 = vadd.f32 %v2093_v32, %v2051_v26  ;;  %v2272_v47 = vmax.f32 %v2092_v57, 0.0 }
 0x1bb   :  { %v2095_v38 = vpop.f32.mrf.mxu1  ;;  %v2054_v39 = vpop.f32.mrf.mxu0 }
 0x1bc   :  { %v2096_v40 = vadd.f32 %v2095_v38, %v2053_v36  ;;  %v2055_v59 = vadd.f32 %v2054_v39, %v2012_v34  ;;  %v2273_v44 = vmax.f32 %v2094_v27, 0.0 }
 0x1bd   :  { %v2097_v41 = vpop.f32.mrf.mxu1 }
 0x1be   :  { %v2098_v42 = vadd.f32 %v2097_v41, %v2055_v59  ;;  %v2276_v43 = vmax.f32 %v2096_v40, 0.0 }
 0x1c0   :  { %v2277_v60 = vmax.f32 %v2098_v42, 0.0  ;;  %v2280_v12 = vpack.c.bf16 %v2276_v43, %v2272_v47  ;;  %v4017_v43 = vld [vmem:[#allocation6 + $0x50] sm:$0xff]   ;;  %v4022_v47 = vld [vmem:[#allocation6] sm:$0xff]  }
 0x1c2   :  { %v2281_v56 = vpack.c.bf16 %v2277_v60, %v2273_v44  ;;  %v4018_v44 = vld [vmem:[#allocation6 + $0x10] sm:$0xff]   ;;  %v4019_v60 = vld [vmem:[#allocation6 + $0x48] sm:$0xff]  }
 0x1c4   :  { %2712 = vmatprep.mubr.bf16.mxu0 %v2281_v56  ;;  %v4023_v56 = vld [vmem:[%s4408_s6 + $0x38] sm:$0xff]  }
 0x1c5   :  { %2713 = vmatmul.mubr.bf16.vlgmr.msra.gmra.mxu0 %v2280_v12  ;;  %v4024_v12 = vld [vmem:[%s4408_s6 + $0x30] sm:$0xff]  }
 0x1c6   :  { %3461 = vmatpush3.bf16.msra.mxu0 %v4008_v62  ;;  %v2348_v62 = vld [vmem:[%s4403_s1 + $0xc] sm:$0x3] }
 0x1c7   :  { %3462 = vmatprep.subr.bf16.mxu0 %v4009_v1 }
 0x1ca   :  { %3463 = vmatpush3.bf16.msra.mxu0 %v4010_v2  ;;  %v2357_v2 = vrot.slane %v2348_v62, %v4186_v16 }
 0x1cb   :  { %3464 = vmatprep.subr.bf16.mxu0 %v4011_v4  ;;  %v2353_v4 = vrot.slane %v2348_v62, %v4190_v19 }
 0x1ce   :  { %3465 = vmatpush3.bf16.msra.mxu0 %v4012_v51 }
 0x1cf   :  { %3466 = vmatprep.subr.bf16.mxu0 %v4013_v22 }
 0x1d2   :  { %3467 = vmatpush3.bf16.msra.mxu0 %v4014_v3 }
 0x1d3   :  { %3468 = vmatprep.subr.bf16.mxu0 %v4015_v6 }
 0x1d6   :  { %3469 = vmatpush3.bf16.msra.mxu0 %v4016_v7 }
 0x1d7   :  { %3470 = vmatprep.subr.bf16.mxu0 %v4017_v43 }
 0x1da   :  { %3471 = vmatpush3.bf16.msra.mxu0 %v4018_v44 }
 0x1db   :  { %3472 = vmatprep.subr.bf16.mxu0 %v4019_v60 }
 0x1de   :  { %3473 = vmatpush3.bf16.msra.mxu0 %v4020_v13 }
 0x1df   :  { %3474 = vmatprep.subr.bf16.mxu0 %v4021_v46 }
 0x1e2   :  { %3475 = vmatpush3.bf16.msra.mxu0 %v4022_v47 }
 0x1f5   :  { %v2134_v8 = vpop.f32.mrf.mxu0 }
 0x1f6   :  { %v2135_v10 = vadd.f32 %v2134_v8, %v639_v54 }
 0x1f7   :  { %v2177_v23 = vpop.f32.mrf.mxu1  ;;  %v2136_v24 = vpop.f32.mrf.mxu0 }
 0x1f8   :  { %v2137_v18 = vadd.f32 %v2136_v24, %v643_v53  ;;  %v2178_v50 = vadd.f32 %v2177_v23, %v2135_v10 }
 0x1f9   :  { %v2179_v52 = vpop.f32.mrf.mxu1  ;;  %v2138_v11 = vpop.f32.mrf.mxu0 }
 0x1fa   :  { %v2139_v28 = vadd.f32 %v2138_v11, %v639_v54  ;;  %v2180_v29 = vadd.f32 %v2179_v52, %v2137_v18 }
 0x1fb   :  { %v2181_v15 = vpop.f32.mrf.mxu1  ;;  %v2140_v25 = vpop.f32.mrf.mxu0 }
 0x1fc   :  { %v2141_v30 = vadd.f32 %v2140_v25, %v643_v53  ;;  %v2182_v31 = vadd.f32 %v2181_v15, %v2139_v28 }
 0x1fd   :  { %v2183_v35 = vpop.f32.mrf.mxu1 }
 0x1fe   :  { %v2184_v32 = vadd.f32 %v2183_v35, %v2141_v30  ;;  %v4028_v30 = vld [vmem:[%s4408_s6 + $0x10] sm:$0xff]  }
 0x235   :  { %v2220_v55 = vpop.f32.mrf.mxu0 }
 0x236   :  { %v2221_v26 = vadd.f32 %v2220_v55, %v2178_v50  ;;  %v4029_v50 = vld [vmem:[%s4408_s6 + $0x8] sm:$0xff]  }
 0x237   :  { %v2263_v45 = vpop.f32.mrf.mxu1  ;;  %v2222_v5 = vpop.f32.mrf.mxu0 }
 0x238   :  { %v2223_v20 = vadd.f32 %v2222_v5, %v2180_v29  ;;  %v2264_v58 = vadd.f32 %v2263_v45, %v2221_v26  ;;  %v4027_v29 = vld [vmem:[%s4408_s6 + $0x18] sm:$0xff]   ;;  %v4030_v45 = vld [vmem:[%s4408_s6] sm:$0xff]   ;;  %v3433_v26 = vld [vmem:[%s4403_s1 + $0xe] ss:$0 sm:$0xff] }
 0x239   :  { %v2265_v17 = vpop.f32.mrf.mxu1  ;;  %v2224_v21 = vpop.f32.mrf.mxu0 }
 0x23a   :  { %v2225_v14 = vadd.f32 %v2224_v21, %v2182_v31  ;;  %v2266_v34 = vadd.f32 %v2265_v17, %v2223_v20  ;;  %v2274_v57 = vmax.f32 %v2264_v58, 0.0 }
 0x23b   :  { %v2267_v9 = vpop.f32.mrf.mxu1  ;;  %v2226_v33 = vpop.f32.mrf.mxu0 }
 0x23c   :  { %v2268_v36 = vadd.f32 %v2267_v9, %v2225_v14  ;;  %v2227_v37 = vadd.f32 %v2226_v33, %v2184_v32  ;;  %v2275_v40 = vmax.f32 %v2266_v34, 0.0 }
 0x23d   :  { %v2269_v38 = vpop.f32.mrf.mxu1 }
 0x23e   :  { %v2270_v39 = vadd.f32 %v2269_v38, %v2227_v37  ;;  %v2278_v27 = vmax.f32 %v2268_v36, 0.0  ;;  %v3065_v37 = vld [vmem:[%s4409_s7] sm:$0x1]  ;;  %v3450_v38 = vld [vmem:[%s4403_s1 + $0xf] ss:$0 sm:$0xff] }
 0x23f   :  { %v3066_v58 = vunpack.c.l.bf16 %v3065_v37 }
 0x240   :  { %v2279_v59 = vmax.f32 %v2270_v39, 0.0  ;;  %v2282_v42 = vpack.c.bf16 %v2278_v27, %v2274_v57 }
 0x242   :  { %v2283_v41 = vpack.c.bf16 %v2279_v59, %v2275_v40  ;;  %v3070_v40 = vrot.slane %v3066_v58, %v4190_v19 }
 0x244   :  { %2755 = vmatprep.mubr.bf16.mxu1 %v2283_v41  ;;  %v3083_v41 = vrot.slane %v3066_v58, %v4186_v16  ;;  %v3459_v16 = vld [vmem:[%s4403_s1 + $0x10] ss:$0 sm:$0xff] }
 0x245   :  { %2756 = vmatmul.mubr.bf16.vlgmr.msra.gmra.mxu1 %v2282_v42 }
 0x246   :  { %3492 = vmatpush3.bf16.msra.mxu1 %v4023_v56  ;;  %3507 = vmatprep.mubr.msk.bf16.mxu1 %vm4107_vm0, %v4106_v61 }
 0x247   :  { %3493 = vmatprep.subr.bf16.mxu1 %v4106_v61 }
 0x24a   :  { %3494 = vmatpush3.bf16.msra.mxu1 %v4024_v12 }
 0x24b   :  { %3495 = vmatprep.subr.bf16.mxu1 %v4106_v61 }
 0x24e   :  { %3496 = vmatpush3.bf16.msra.mxu1 %v4025_v48 }
 0x24f   :  { %3497 = vmatprep.subr.bf16.mxu1 %v4106_v61 }
 0x252   :  { %3498 = vmatpush3.bf16.msra.mxu1 %v4026_v49 }
 0x253   :  { %3499 = vmatprep.subr.bf16.mxu1 %v4106_v61 }
 0x256   :  { %3500 = vmatpush3.bf16.msra.mxu1 %v4027_v29 }
 0x257   :  { %3501 = vmatprep.subr.bf16.mxu1 %v4106_v61 }
 0x25a   :  { %3502 = vmatpush3.bf16.msra.mxu1 %v4028_v30 }
 0x25b   :  { %3503 = vmatprep.subr.bf16.mxu1 %v4106_v61 }
 0x25e   :  { %3504 = vmatpush3.bf16.msra.mxu1 %v4029_v50 }
 0x25f   :  { %3505 = vmatprep.subr.bf16.mxu1 %v4106_v61 }
 0x262   :  { %3506 = vmatpush3.bf16.msra.mxu1 %v4030_v45 }
 0x285   :  { %v2714_v63 = vpop.f32.mrf.mxu0 }
 0x286   :  { %v2715_v8 = vadd.f32 %v2714_v63, %v2353_v4 }
 0x287   :  { %v2716_v0 = vpop.f32.mrf.mxu0 }
 0x288   :  { %v2717_v6 = vadd.f32 %v2716_v0, %v2357_v2 }
 0x289   :  { %v2718_v1 = vpop.f32.mrf.mxu0 }
 0x28a   :  { %v2719_v7 = vadd.f32 %v2718_v1, %v2353_v4 }
 0x28b   :  { %v2720_v22 = vpop.f32.mrf.mxu0 }
 0x28c   :  { %v2721_v24 = vadd.f32 %v2720_v22, %v2357_v2 }
 0x305   :  { %v2757_v51 = vpop.f32.mrf.mxu1 }
 0x306   :  { %v2758_v54 = vadd.f32 %v2757_v51, %v2715_v8 }
 0x307   :  { %v2759_v3 = vpop.f32.mrf.mxu1 }
 0x308   :  { %v2760_v52 = vadd.f32 %v2759_v3, %v2717_v6  ;;  %v2766_v28 = vmax.f32 %v2758_v54, 0.0 }
 0x309   :  { %v2761_v23 = vpop.f32.mrf.mxu1 }
 0x30a   :  { %v2762_v53 = vadd.f32 %v2761_v23, %v2719_v7  ;;  %v2767_v10 = vmax.f32 %v2760_v52, 0.0 }
 0x30b   :  { %v2763_v11 = vpop.f32.mrf.mxu1 }
 0x30c   :  { %v2764_v15 = vadd.f32 %v2763_v11, %v2721_v24  ;;  %v2768_v18 = vmax.f32 %v2762_v53, 0.0 }
 0x30e   :  { %v2769_v25 = vmax.f32 %v2764_v15, 0.0  ;;  %v2770_v55 = vpack.c.bf16 %v2768_v18, %v2766_v28 }
 0x310   :  { %v2771_v35 = vpack.c.bf16 %v2769_v25, %v2767_v10 }
 0x312   :  { %2939 = vmatprep.mubr.bf16.mxu0 %v2771_v35 }
 0x313   :  { %2940 = vmatmul.mubr.bf16.vlgmr.msra.gmra.mxu0 %v2770_v55 }
 0x3d3   :  { %v3476_v5 = vpop.f32.mrf.mxu0 }
 0x3d5   :  { %v3477_v31 = vpop.f32.mrf.mxu0 }
 0x3d6   :  { %v3478_v20 = vadd.f32 %v3477_v31, %v3476_v5 }
 0x3d7   :  { %v3479_v17 = vpop.f32.mrf.mxu0 }
 0x3d8   :  { %v2942_v32 = vadd.f32 %v3478_v20, %v3433_v26 }
 0x3d9   :  { %v3480_v21 = vpop.f32.mrf.mxu0 }
 0x3da   :  { %v3481_v14 = vadd.f32 %v3480_v21, %v3479_v17  ;;  %v2948_v33 = vmax.f32 %v2942_v32, 0.0 }
 0x3dc   :  { %v2945_v9 = vadd.f32 %v3481_v14, %v3433_v26 }
 0x3de   :  { %v2949_v34 = vmax.f32 %v2945_v9, 0.0 }
 0x3e0   :  { %v2950_v36 = vpack.c.bf16 %v2949_v34, %v2948_v33 }
 0x3e2   :  { %3508 = vmatmul.mubr.bf16.vlgmr.msra.gmra.mxu1 %v2950_v36 }
 0x4a2   :  { %v3056_v39 = vpop.f32.mrf.mxu1 }
 0x4a3   :  { %v3057_v27 = vadd.f32 %v3450_v38, %v3056_v39 }
 0x4a4   :  { %v3509_v59 = vpop.f32.mrf.mxu1 }
 0x4a5   :  { %v3063_v57 = vmax.f32 %v3057_v27, 0.0 }
 0x4a6   :  { %v3059_v42 = vpop.f32.mrf.mxu1 }
 0x4a7   :  { %v3060_v43 = vadd.f32 %v3450_v38, %v3059_v42  ;;  %v3071_v44 = vmul.f32 %v3070_v40, %v3063_v57  ;;  %v3084_v47 = vmul.f32 %v3083_v41, %v3063_v57 }
 0x4a8   :  { %v3510_v60 = vpop.f32.mrf.mxu1 }
 0x4a9   :  { %v3064_v13 = vmax.f32 %v3060_v43, 0.0  ;;  %v3074_v46 = vsel %vm3073_vm1, %v3071_v44, 0.0  ;;  %v3086_v61 = vsel %vm3073_vm1, %v3084_v47, 0.0 }
 0x4aa   :  { %3075 = vadd.xlane.f32.xlu0 %v3074_v46 }
 0x4ab   :  { %v3072_v56 = vmul.f32 %v3070_v40, %v3064_v13  ;;  %v3085_v48 = vmul.f32 %v3083_v41, %v3064_v13 }
 0x4ad   :  { %v3077_v12 = vsel %vm3073_vm1, %v3072_v56, 0.0  ;;  %v3089_v19 = vsel %vm3073_vm1, %v3085_v48, 0.0 }
 0x4ae   :  { %3087 = vadd.xlane.f32.xlu0 %v3086_v61  ;;  %3078 = vadd.xlane.f32.xlu1 %v3077_v12 }
 0x4b2   :  { %3090 = vadd.xlane.f32.xlu0 %v3089_v19 }
 0x533   :  { %v3076_v49 = vpop.xlane.xlu0 %3075 }
 0x537   :  { %v3088_v63 = vpop.xlane.xlu0 %3087  ;;  %v3079_v1 = vpop.xlane.xlu1 %3078 }
 0x538   :  { %v3093_v0 = vsel %vm3092_vm2, %v3076_v49, %v3088_v63 }
 0x539   :  { %v3102_v62 = vadd.f32 %v3459_v16, %v3093_v0 }
 0x53b   :  { %3105 = vst.msk [vmem:[%s4410_s8] sm:$0xff] %vm3104_vm3, %v3102_v62  ;;  %v3091_v2 = vpop.xlane.xlu0 %3090 }
 0x53c   :  { %v3094_v4 = vsel %vm3092_vm2, %v3079_v1, %v3091_v2 }
 0x53d   :  { %v3103_v51 = vadd.f32 %v3459_v16, %v3094_v4 }
 0x53f   :  { %3106 = vst.msk [vmem:[%s4410_s8 + $0x8] sm:$0xff] %vm3104_vm3, %v3103_v51 }
 0x540   :  { %3111 = vsyncpa [#allocation3], 1 }
 0x541   :  { %3112 = vsyncpa [#allocation5], 1 }

</bundles_post_ra>
